<compile_context>
chip_gen: v5e
topology: v5e:2x2
jax: 0.10.0
libtpu: 0.0.40
codegen_flags: <defaults>
</compile_context>

<pallas_src>
import functools

import jax
import jax.numpy as jnp
from jax.experimental import pallas as pl
from jax.experimental.pallas import tpu as pltpu

FEATURE_DIM = 8      # F
TOKEN_DIM   = 128    # query_dim
TOKEN_NUM   = 16
HEADS       = 8
DIM_HEAD    = 64
INNER_DIM   = HEADS * DIM_HEAD   # 512
INIT_CONST  = 0.02


def _policy_stem_kernel(tb, x_ref, a_ref, c_ref, wvo_ref, bo_ref, o_ref):
    """One grid step == `tb` batch elements.

    x_ref   : [tb, F, n]        bf16  tokens transposed (lane axis = tokens)
    a_ref   : [H*16=128, F]     bf16  (scale*q) folded with K projection
    c_ref   : [128, 1]          f32   folded K-bias term
    wvo_ref : [H, F, 128]       bf16  V projection folded into output proj
    bo_ref  : [1, 128]          f32   output bias (+ folded V-bias term)
    o_ref   : [tb, 16, 128]     f32
    """
    a = a_ref[...]                                           # [128, F] bf16
    c = c_ref[...]                                           # [128, 1] f32
    wvo = wvo_ref[...]                                       # [H, F, 128] bf16
    bias = jnp.broadcast_to(bo_ref[...], (TOKEN_NUM, TOKEN_DIM))   # hoisted

    for b in range(tb):                                      # static unroll
        xb = x_ref[b]                                        # [F, n] bf16
        # Scores for all heads & query tokens in ONE matmul: [H*16, n]
        sim = jnp.dot(a, xb, preferred_element_type=jnp.float32) + c
        sim = sim - jnp.max(sim, axis=-1, keepdims=True)
        p = jnp.exp(sim)
        denom = jnp.sum(p, axis=-1, keepdims=True)           # [128, 1]
        # Un-normalized attn @ x_b (contraction over tokens): [128, F]
        u = jnp.einsum("rn,fn->rf", p.astype(jnp.bfloat16), xb,
                       preferred_element_type=jnp.float32)
        # Normalize the tiny [128, F] intermediate, not the [128, n] weights.
        u = (u * pl.reciprocal(denom, approx=True)).astype(jnp.bfloat16)
        # Per-head output projection with folded Wv@Wo; output is lane-dense.
        res = bias
        for h in range(HEADS):                               # static unroll
            res = res + jnp.dot(u[h * TOKEN_NUM:(h + 1) * TOKEN_NUM], wvo[h],
                                preferred_element_type=jnp.float32)
        o_ref[b] = res


def _tensorcores_per_chip():
    """1 on v5e/v6e, 2 on v7x (heuristic; falls back to 1)."""
    try:
        kind = jax.devices()[0].device_kind.lower()
        if "7" in kind:          # e.g. "TPU7x" / "TPU v7x"
            return 2
    except Exception:
        pass
    return 1


def policy_stem_forward(x, params, *, block_b=8):
    """x: [B, ..., F] float32 -> [B, 16, 128] float32."""
    B = x.shape[0]
    assert x.shape[-1] == FEATURE_DIM
    x = x.reshape(B, -1, FEATURE_DIM)        # [B, N, F]
    N = x.shape[1]
    f32, bf16 = jnp.float32, jnp.bfloat16
    p = params

    # ---- wrapper-side algebraic folds / layout prep (tiny, done once) ----
    # feature_extractor folded into the K / V projections.
    wk_f = p["w_fe"] @ p["w_k"]          # [F, 512]
    bk_f = p["b_fe"] @ p["w_k"]          # [1, 512]
    wv_f = p["w_fe"] @ p["w_v"]          # [F, 512]
    bv_f = p["b_fe"] @ p["w_v"]          # [1, 512]

    def head_major(w):                   # [.., H*D] -> [H, .., D]
        return w.reshape(w.shape[0], HEADS, DIM_HEAD).transpose(1, 0, 2)

    wk_h = head_major(wk_f)                              # [H, F, 64]
    bk_h = head_major(bk_f)                              # [H, 1, 64]
    wv_h = head_major(wv_f)                              # [H, F, 64]
    bv_h = head_major(bv_f)                              # [H, 1, 64]
    wo_h = p["w_o"].reshape(HEADS, DIM_HEAD, TOKEN_DIM)  # [H, 64, 128]

    scale = DIM_HEAD ** (-0.5)
    q_h = head_major((p["tokens"] @ p["w_q"]) * scale)   # [H, 16, 64], pre-scaled

    # K side folded into the (batch-invariant) queries:
    #   sim_h = q_h (x Wk'_h + bk'_h)^T * scale = A_h @ x^T + c_h
    a_all = jnp.einsum("htd,hfd->htf", q_h, wk_h)        # [H, 16, F]
    a_all = a_all.reshape(HEADS * TOKEN_NUM, FEATURE_DIM).astype(bf16)   # [128, F]
    c_all = jnp.einsum("htd,hod->hto", q_h, bk_h)        # [H, 16, 1]
    c_all = c_all.reshape(HEADS * TOKEN_NUM, 1).astype(f32)              # [128, 1]

    # V side folded into the output projection:
    #   out = sum_h (attn_h @ x) @ (Wv'_h @ Wo_h) + (b_o + sum_h bv'_h @ Wo_h)
    wvo = jnp.einsum("hfd,hdo->hfo", wv_h, wo_h).astype(bf16)            # [H, F, 128]
    b_out = (p["b_o"] + jnp.einsum("hid,hdo->io", bv_h, wo_h)).astype(f32)  # [1, 128]

    # ---- batch blocking ----
    # Only force >=2 grid steps when the chip actually has 2 TensorCores (v7x);
    # on single-TC v5e/v6e the whole batch in one step avoids per-step overhead.
    n_tc = _tensorcores_per_chip()
    tb = max(1, min(block_b, pl.cdiv(B, n_tc)))
    pb = pl.cdiv(B, tb) * tb

    # Lane-dense x: token axis last (lane axis); also gives x_b^T directly so no
    # in-kernel transpose is needed, and the (8,128) BlockSpec rule holds for
    # any N (block last two dims are F=8 and the full N).
    x_t = jnp.transpose(x, (0, 2, 1)).astype(bf16)       # [B, F, N]
    if pb != B:
        x_t = jnp.pad(x_t, ((0, pb - B), (0, 0), (0, 0)))
    grid = (pb // tb,)

    def full(shape):
        return pl.BlockSpec(shape, lambda g, _s=shape: tuple(0 for _ in _s))

    out = pl.pallas_call(
        functools.partial(_policy_stem_kernel, tb),
        out_shape=jax.ShapeDtypeStruct((pb, TOKEN_NUM, TOKEN_DIM), jnp.float32),
        grid_spec=pltpu.PrefetchScalarGridSpec(
            num_scalar_prefetch=0,
            grid=grid,
            in_specs=[
                pl.BlockSpec((tb, FEATURE_DIM, N), lambda g: (g, 0, 0)),  # x^T
                full((HEADS * TOKEN_NUM, FEATURE_DIM)),                   # A
                full((HEADS * TOKEN_NUM, 1)),                             # c
                full((HEADS, FEATURE_DIM, TOKEN_DIM)),                    # Wvo
                full((1, TOKEN_DIM)),                                     # b_out
            ],
            out_specs=pl.BlockSpec((tb, TOKEN_NUM, TOKEN_DIM),
                                   lambda g: (g, 0, 0)),
        ),
        compiler_params=pltpu.CompilerParams(
            dimension_semantics=("parallel",)),
    )(x_t, a_all, c_all, wvo, b_out)
    return out[:B]


def init_params(key):
    """Deterministic synthetic parameters (shapes match the PyTorch module)."""
    ks = jax.random.split(key, 8)
    s = 0.02
    # stored already transposed to [in, out] so the math is x @ W
    return {
        "tokens": jax.random.normal(ks[0], (TOKEN_NUM, TOKEN_DIM), jnp.float32) * INIT_CONST,
        "w_fe":   jax.random.normal(ks[1], (FEATURE_DIM, TOKEN_DIM), jnp.float32) * s,
        "b_fe":   jax.random.normal(ks[2], (1, TOKEN_DIM), jnp.float32) * s,
        "w_q":    jax.random.normal(ks[3], (TOKEN_DIM, INNER_DIM), jnp.float32) * s,
        "w_k":    jax.random.normal(ks[4], (TOKEN_DIM, INNER_DIM), jnp.float32) * s,
        "w_v":    jax.random.normal(ks[5], (TOKEN_DIM, INNER_DIM), jnp.float32) * s,
        "w_o":    jax.random.normal(ks[6], (INNER_DIM, TOKEN_DIM), jnp.float32) * s,
        "b_o":    jax.random.normal(ks[7], (1, TOKEN_DIM), jnp.float32) * s,
    }


def reference_forward(x, p):
    """Pure-JAX f32 reference for correctness checking."""
    feat = x @ p["w_fe"] + p["b_fe"]                              # [B, N, 128]
    B, N, _ = feat.shape
    tokens = jnp.broadcast_to(p["tokens"], (B, TOKEN_NUM, TOKEN_DIM))
    q = tokens @ p["w_q"]
    k = feat @ p["w_k"]
    v = feat @ p["w_v"]
    reshape_h = lambda t, n: t.reshape(B, n, HEADS, DIM_HEAD).transpose(0, 2, 1, 3)
    qh, kh, vh = reshape_h(q, TOKEN_NUM), reshape_h(k, N), reshape_h(v, N)
    sim = jnp.einsum("bhid,bhjd->bhij", qh, kh) * (DIM_HEAD ** -0.5)
    attn = jax.nn.softmax(sim, axis=-1)
    out = jnp.einsum("bhij,bhjd->bhid", attn, vh)
    out = out.transpose(0, 2, 1, 3).reshape(B, TOKEN_NUM, INNER_DIM)
    return out @ p["w_o"] + p["b_o"]


if __name__ == "__main__":
    key = jax.random.PRNGKey(0)
    k_param, k_x = jax.random.split(key)
    params = init_params(k_param)

    B, N = 2, 8                           # small synthetic shapes: [B, N, F]
    x = jax.random.normal(k_x, (B, N, FEATURE_DIM), jnp.float32)

    out = policy_stem_forward(x, params)
    out = jax.block_until_ready(out)

    ref = reference_forward(x, params)
    assert out.shape == (B, TOKEN_NUM, TOKEN_DIM), out.shape
    # bf16 MXU operands + approx reciprocal + algebraic weight folds: compare
    # against the f32 reference with a correspondingly loose tolerance.
    max_err = float(jnp.max(jnp.abs(out - ref)))
    assert jnp.allclose(out, ref, atol=2e-3, rtol=2e-2), max_err
    print("KERNEL_OK")
</pallas_src>

<mosaic_0001>
module attributes {stable_mosaic.version = 11 : i64} {
  func.func @_policy_stem_kernel(%arg0: i32, %arg1: memref<2x8x8xbf16, #tpu.memory_space<vmem>>, %arg2: memref<128x8xbf16, #tpu.memory_space<vmem>>, %arg3: memref<128x1xf32, #tpu.memory_space<vmem>>, %arg4: memref<8x8x128xbf16, #tpu.memory_space<vmem>>, %arg5: memref<1x128xf32, #tpu.memory_space<vmem>>, %arg6: memref<2x16x128xf32, #tpu.memory_space<vmem>>) attributes {dimension_semantics = [#tpu.dimension_semantics<parallel>], iteration_bounds = array<i64: 1>, scalar_prefetch = 0 : i64, scratch_operands = 0 : i64, tpu.core_type = #tpu.core_type<tc>, window_params = [{transform_indices = @transform_0, window_bounds = array<i64: 2, 8, 8>}, {pipeline_mode = #tpu.pipeline_mode<synchronous>, transform_indices = @transform_1, window_bounds = array<i64: 128, 8>}, {pipeline_mode = #tpu.pipeline_mode<synchronous>, transform_indices = @transform_2, window_bounds = array<i64: 128, 1>}, {pipeline_mode = #tpu.pipeline_mode<synchronous>, transform_indices = @transform_3, window_bounds = array<i64: 8, 8, 128>}, {pipeline_mode = #tpu.pipeline_mode<synchronous>, transform_indices = @transform_4, window_bounds = array<i64: 1, 128>}, {transform_indices = @transform_5, window_bounds = array<i64: 2, 16, 128>}]} {
    %c0 = arith.constant 0 : index
    %c0_0 = arith.constant 0 : index
    %0 = vector.load %arg2[%c0, %c0_0] : memref<128x8xbf16, #tpu.memory_space<vmem>>, vector<128x8xbf16>
    %c0_1 = arith.constant 0 : index
    %c0_2 = arith.constant 0 : index
    %1 = vector.load %arg3[%c0_1, %c0_2] : memref<128x1xf32, #tpu.memory_space<vmem>>, vector<128x1xf32>
    %c0_3 = arith.constant 0 : index
    %c0_4 = arith.constant 0 : index
    %c0_5 = arith.constant 0 : index
    %2 = vector.load %arg4[%c0_3, %c0_4, %c0_5] : memref<8x8x128xbf16, #tpu.memory_space<vmem>>, vector<8x8x128xbf16>
    %c0_6 = arith.constant 0 : index
    %c0_7 = arith.constant 0 : index
    %3 = vector.load %arg5[%c0_6, %c0_7] : memref<1x128xf32, #tpu.memory_space<vmem>>, vector<1x128xf32>
    %4 = vector.shape_cast %3 : vector<1x128xf32> to vector<1x128xf32>
    %5 = vector.broadcast %4 : vector<1x128xf32> to vector<16x128xf32>
    %c0_8 = arith.constant 0 : index
    %c0_9 = arith.constant 0 : index
    %c0_10 = arith.constant 0 : index
    %6 = vector.load %arg1[%c0_8, %c0_9, %c0_10] : memref<2x8x8xbf16, #tpu.memory_space<vmem>>, vector<1x8x8xbf16>
    %7 = vector.shape_cast %6 : vector<1x8x8xbf16> to vector<8x8xbf16>
    %cst = arith.constant dense<0.000000e+00> : vector<128x8xf32>
    %8 = tpu.matmul %0, %7, %cst {dimension_numbers = #tpu.dot_dimension_numbers<[1], [0], [0], [1], [0, 0, 1, 1], [], []>} : vector<128x8xbf16>, vector<8x8xbf16>, vector<128x8xf32> -> vector<128x8xf32>
    %9 = vector.broadcast %1 : vector<128x1xf32> to vector<128x8xf32>
    %10 = arith.addf %8, %9 : vector<128x8xf32>
    %cst_11 = arith.constant dense<0xFF800000> : vector<128xf32>
    %11 = vector.multi_reduction <maximumf>, %10, %cst_11 [1] : vector<128x8xf32> to vector<128xf32>
    %12 = vector.shape_cast %11 : vector<128xf32> to vector<128x1xf32>
    %13 = vector.broadcast %12 : vector<128x1xf32> to vector<128x8xf32>
    %14 = arith.subf %10, %13 : vector<128x8xf32>
    %15 = math.exp %14 : vector<128x8xf32>
    %cst_12 = arith.constant dense<0.000000e+00> : vector<128xf32>
    %16 = vector.multi_reduction <add>, %15, %cst_12 [1] : vector<128x8xf32> to vector<128xf32>
    %17 = vector.shape_cast %16 : vector<128xf32> to vector<128x1xf32>
    %18 = arith.truncf %15 : vector<128x8xf32> to vector<128x8xbf16>
    "tpu.trace_start"() <{level = 10 : i32, message = "rn,fn->rf"}> : () -> ()
    %cst_13 = arith.constant dense<0.000000e+00> : vector<128x8xf32>
    %19 = tpu.matmul %18, %7, %cst_13 {dimension_numbers = #tpu.dot_dimension_numbers<[1], [1], [0], [0], [0, 0, 1, 0], [], []>} : vector<128x8xbf16>, vector<8x8xbf16>, vector<128x8xf32> -> vector<128x8xf32>
    "tpu.trace_stop"() : () -> ()
    %20 = tpu.reciprocal %17 {approx = true} : vector<128x1xf32> -> vector<128x1xf32>
    %21 = vector.broadcast %20 : vector<128x1xf32> to vector<128x8xf32>
    %22 = arith.mulf %19, %21 : vector<128x8xf32>
    %23 = arith.truncf %22 : vector<128x8xf32> to vector<128x8xbf16>
    %24 = vector.extract_strided_slice %23 {offsets = [0, 0], sizes = [16, 8], strides = [1, 1]} : vector<128x8xbf16> to vector<16x8xbf16>
    %25 = vector.extract_strided_slice %2 {offsets = [0, 0, 0], sizes = [1, 8, 128], strides = [1, 1, 1]} : vector<8x8x128xbf16> to vector<1x8x128xbf16>
    %26 = vector.shape_cast %25 : vector<1x8x128xbf16> to vector<8x128xbf16>
    %cst_14 = arith.constant dense<0.000000e+00> : vector<16x128xf32>
    %27 = tpu.matmul %24, %26, %cst_14 {dimension_numbers = #tpu.dot_dimension_numbers<[1], [0], [0], [1], [0, 0, 1, 1], [], []>} : vector<16x8xbf16>, vector<8x128xbf16>, vector<16x128xf32> -> vector<16x128xf32>
    %28 = arith.addf %5, %27 : vector<16x128xf32>
    %29 = vector.extract_strided_slice %23 {offsets = [16, 0], sizes = [16, 8], strides = [1, 1]} : vector<128x8xbf16> to vector<16x8xbf16>
    %30 = vector.extract_strided_slice %2 {offsets = [1, 0, 0], sizes = [1, 8, 128], strides = [1, 1, 1]} : vector<8x8x128xbf16> to vector<1x8x128xbf16>
    %31 = vector.shape_cast %30 : vector<1x8x128xbf16> to vector<8x128xbf16>
    %cst_15 = arith.constant dense<0.000000e+00> : vector<16x128xf32>
    %32 = tpu.matmul %29, %31, %cst_15 {dimension_numbers = #tpu.dot_dimension_numbers<[1], [0], [0], [1], [0, 0, 1, 1], [], []>} : vector<16x8xbf16>, vector<8x128xbf16>, vector<16x128xf32> -> vector<16x128xf32>
    %33 = arith.addf %28, %32 : vector<16x128xf32>
    %34 = vector.extract_strided_slice %23 {offsets = [32, 0], sizes = [16, 8], strides = [1, 1]} : vector<128x8xbf16> to vector<16x8xbf16>
    %35 = vector.extract_strided_slice %2 {offsets = [2, 0, 0], sizes = [1, 8, 128], strides = [1, 1, 1]} : vector<8x8x128xbf16> to vector<1x8x128xbf16>
    %36 = vector.shape_cast %35 : vector<1x8x128xbf16> to vector<8x128xbf16>
    %cst_16 = arith.constant dense<0.000000e+00> : vector<16x128xf32>
    %37 = tpu.matmul %34, %36, %cst_16 {dimension_numbers = #tpu.dot_dimension_numbers<[1], [0], [0], [1], [0, 0, 1, 1], [], []>} : vector<16x8xbf16>, vector<8x128xbf16>, vector<16x128xf32> -> vector<16x128xf32>
    %38 = arith.addf %33, %37 : vector<16x128xf32>
    %39 = vector.extract_strided_slice %23 {offsets = [48, 0], sizes = [16, 8], strides = [1, 1]} : vector<128x8xbf16> to vector<16x8xbf16>
    %40 = vector.extract_strided_slice %2 {offsets = [3, 0, 0], sizes = [1, 8, 128], strides = [1, 1, 1]} : vector<8x8x128xbf16> to vector<1x8x128xbf16>
    %41 = vector.shape_cast %40 : vector<1x8x128xbf16> to vector<8x128xbf16>
    %cst_17 = arith.constant dense<0.000000e+00> : vector<16x128xf32>
    %42 = tpu.matmul %39, %41, %cst_17 {dimension_numbers = #tpu.dot_dimension_numbers<[1], [0], [0], [1], [0, 0, 1, 1], [], []>} : vector<16x8xbf16>, vector<8x128xbf16>, vector<16x128xf32> -> vector<16x128xf32>
    %43 = arith.addf %38, %42 : vector<16x128xf32>
    %44 = vector.extract_strided_slice %23 {offsets = [64, 0], sizes = [16, 8], strides = [1, 1]} : vector<128x8xbf16> to vector<16x8xbf16>
    %45 = vector.extract_strided_slice %2 {offsets = [4, 0, 0], sizes = [1, 8, 128], strides = [1, 1, 1]} : vector<8x8x128xbf16> to vector<1x8x128xbf16>
    %46 = vector.shape_cast %45 : vector<1x8x128xbf16> to vector<8x128xbf16>
    %cst_18 = arith.constant dense<0.000000e+00> : vector<16x128xf32>
    %47 = tpu.matmul %44, %46, %cst_18 {dimension_numbers = #tpu.dot_dimension_numbers<[1], [0], [0], [1], [0, 0, 1, 1], [], []>} : vector<16x8xbf16>, vector<8x128xbf16>, vector<16x128xf32> -> vector<16x128xf32>
    %48 = arith.addf %43, %47 : vector<16x128xf32>
    %49 = vector.extract_strided_slice %23 {offsets = [80, 0], sizes = [16, 8], strides = [1, 1]} : vector<128x8xbf16> to vector<16x8xbf16>
    %50 = vector.extract_strided_slice %2 {offsets = [5, 0, 0], sizes = [1, 8, 128], strides = [1, 1, 1]} : vector<8x8x128xbf16> to vector<1x8x128xbf16>
    %51 = vector.shape_cast %50 : vector<1x8x128xbf16> to vector<8x128xbf16>
    %cst_19 = arith.constant dense<0.000000e+00> : vector<16x128xf32>
    %52 = tpu.matmul %49, %51, %cst_19 {dimension_numbers = #tpu.dot_dimension_numbers<[1], [0], [0], [1], [0, 0, 1, 1], [], []>} : vector<16x8xbf16>, vector<8x128xbf16>, vector<16x128xf32> -> vector<16x128xf32>
    %53 = arith.addf %48, %52 : vector<16x128xf32>
    %54 = vector.extract_strided_slice %23 {offsets = [96, 0], sizes = [16, 8], strides = [1, 1]} : vector<128x8xbf16> to vector<16x8xbf16>
    %55 = vector.extract_strided_slice %2 {offsets = [6, 0, 0], sizes = [1, 8, 128], strides = [1, 1, 1]} : vector<8x8x128xbf16> to vector<1x8x128xbf16>
    %56 = vector.shape_cast %55 : vector<1x8x128xbf16> to vector<8x128xbf16>
    %cst_20 = arith.constant dense<0.000000e+00> : vector<16x128xf32>
    %57 = tpu.matmul %54, %56, %cst_20 {dimension_numbers = #tpu.dot_dimension_numbers<[1], [0], [0], [1], [0, 0, 1, 1], [], []>} : vector<16x8xbf16>, vector<8x128xbf16>, vector<16x128xf32> -> vector<16x128xf32>
    %58 = arith.addf %53, %57 : vector<16x128xf32>
    %59 = vector.extract_strided_slice %23 {offsets = [112, 0], sizes = [16, 8], strides = [1, 1]} : vector<128x8xbf16> to vector<16x8xbf16>
    %60 = vector.extract_strided_slice %2 {offsets = [7, 0, 0], sizes = [1, 8, 128], strides = [1, 1, 1]} : vector<8x8x128xbf16> to vector<1x8x128xbf16>
    %61 = vector.shape_cast %60 : vector<1x8x128xbf16> to vector<8x128xbf16>
    %cst_21 = arith.constant dense<0.000000e+00> : vector<16x128xf32>
    %62 = tpu.matmul %59, %61, %cst_21 {dimension_numbers = #tpu.dot_dimension_numbers<[1], [0], [0], [1], [0, 0, 1, 1], [], []>} : vector<16x8xbf16>, vector<8x128xbf16>, vector<16x128xf32> -> vector<16x128xf32>
    %63 = arith.addf %58, %62 : vector<16x128xf32>
    %c0_22 = arith.constant 0 : index
    %c0_23 = arith.constant 0 : index
    %c0_24 = arith.constant 0 : index
    %64 = vector.load %arg6[%c0_22, %c0_23, %c0_24] : memref<2x16x128xf32, #tpu.memory_space<vmem>>, vector<1x16x128xf32>
    %65 = vector.shape_cast %64 : vector<1x16x128xf32> to vector<16x128xf32>
    %66 = vector.shape_cast %63 : vector<16x128xf32> to vector<1x16x128xf32>
    tpu.vector_store %arg6[%c0_22, %c0_23, %c0_24], %66 {strides = array<i32>} : memref<2x16x128xf32, #tpu.memory_space<vmem>>, vector<1x16x128xf32>,
    %c1 = arith.constant 1 : index
    %c0_25 = arith.constant 0 : index
    %c0_26 = arith.constant 0 : index
    %67 = vector.load %arg1[%c1, %c0_25, %c0_26] : memref<2x8x8xbf16, #tpu.memory_space<vmem>>, vector<1x8x8xbf16>
    %68 = vector.shape_cast %67 : vector<1x8x8xbf16> to vector<8x8xbf16>
    %cst_27 = arith.constant dense<0.000000e+00> : vector<128x8xf32>
    %69 = tpu.matmul %0, %68, %cst_27 {dimension_numbers = #tpu.dot_dimension_numbers<[1], [0], [0], [1], [0, 0, 1, 1], [], []>} : vector<128x8xbf16>, vector<8x8xbf16>, vector<128x8xf32> -> vector<128x8xf32>
    %70 = vector.broadcast %1 : vector<128x1xf32> to vector<128x8xf32>
    %71 = arith.addf %69, %70 : vector<128x8xf32>
    %cst_28 = arith.constant dense<0xFF800000> : vector<128xf32>
    %72 = vector.multi_reduction <maximumf>, %71, %cst_28 [1] : vector<128x8xf32> to vector<128xf32>
    %73 = vector.shape_cast %72 : vector<128xf32> to vector<128x1xf32>
    %74 = vector.broadcast %73 : vector<128x1xf32> to vector<128x8xf32>
    %75 = arith.subf %71, %74 : vector<128x8xf32>
    %76 = math.exp %75 : vector<128x8xf32>
    %cst_29 = arith.constant dense<0.000000e+00> : vector<128xf32>
    %77 = vector.multi_reduction <add>, %76, %cst_29 [1] : vector<128x8xf32> to vector<128xf32>
    %78 = vector.shape_cast %77 : vector<128xf32> to vector<128x1xf32>
    %79 = arith.truncf %76 : vector<128x8xf32> to vector<128x8xbf16>
    "tpu.trace_start"() <{level = 10 : i32, message = "rn,fn->rf"}> : () -> ()
    %cst_30 = arith.constant dense<0.000000e+00> : vector<128x8xf32>
    %80 = tpu.matmul %79, %68, %cst_30 {dimension_numbers = #tpu.dot_dimension_numbers<[1], [1], [0], [0], [0, 0, 1, 0], [], []>} : vector<128x8xbf16>, vector<8x8xbf16>, vector<128x8xf32> -> vector<128x8xf32>
    "tpu.trace_stop"() : () -> ()
    %81 = tpu.reciprocal %78 {approx = true} : vector<128x1xf32> -> vector<128x1xf32>
    %82 = vector.broadcast %81 : vector<128x1xf32> to vector<128x8xf32>
    %83 = arith.mulf %80, %82 : vector<128x8xf32>
    %84 = arith.truncf %83 : vector<128x8xf32> to vector<128x8xbf16>
    %85 = vector.extract_strided_slice %84 {offsets = [0, 0], sizes = [16, 8], strides = [1, 1]} : vector<128x8xbf16> to vector<16x8xbf16>
    %86 = vector.extract_strided_slice %2 {offsets = [0, 0, 0], sizes = [1, 8, 128], strides = [1, 1, 1]} : vector<8x8x128xbf16> to vector<1x8x128xbf16>
    %87 = vector.shape_cast %86 : vector<1x8x128xbf16> to vector<8x128xbf16>
    %cst_31 = arith.constant dense<0.000000e+00> : vector<16x128xf32>
    %88 = tpu.matmul %85, %87, %cst_31 {dimension_numbers = #tpu.dot_dimension_numbers<[1], [0], [0], [1], [0, 0, 1, 1], [], []>} : vector<16x8xbf16>, vector<8x128xbf16>, vector<16x128xf32> -> vector<16x128xf32>
    %89 = arith.addf %5, %88 : vector<16x128xf32>
    %90 = vector.extract_strided_slice %84 {offsets = [16, 0], sizes = [16, 8], strides = [1, 1]} : vector<128x8xbf16> to vector<16x8xbf16>
    %91 = vector.extract_strided_slice %2 {offsets = [1, 0, 0], sizes = [1, 8, 128], strides = [1, 1, 1]} : vector<8x8x128xbf16> to vector<1x8x128xbf16>
    %92 = vector.shape_cast %91 : vector<1x8x128xbf16> to vector<8x128xbf16>
    %cst_32 = arith.constant dense<0.000000e+00> : vector<16x128xf32>
    %93 = tpu.matmul %90, %92, %cst_32 {dimension_numbers = #tpu.dot_dimension_numbers<[1], [0], [0], [1], [0, 0, 1, 1], [], []>} : vector<16x8xbf16>, vector<8x128xbf16>, vector<16x128xf32> -> vector<16x128xf32>
    %94 = arith.addf %89, %93 : vector<16x128xf32>
    %95 = vector.extract_strided_slice %84 {offsets = [32, 0], sizes = [16, 8], strides = [1, 1]} : vector<128x8xbf16> to vector<16x8xbf16>
    %96 = vector.extract_strided_slice %2 {offsets = [2, 0, 0], sizes = [1, 8, 128], strides = [1, 1, 1]} : vector<8x8x128xbf16> to vector<1x8x128xbf16>
    %97 = vector.shape_cast %96 : vector<1x8x128xbf16> to vector<8x128xbf16>
    %cst_33 = arith.constant dense<0.000000e+00> : vector<16x128xf32>
    %98 = tpu.matmul %95, %97, %cst_33 {dimension_numbers = #tpu.dot_dimension_numbers<[1], [0], [0], [1], [0, 0, 1, 1], [], []>} : vector<16x8xbf16>, vector<8x128xbf16>, vector<16x128xf32> -> vector<16x128xf32>
    %99 = arith.addf %94, %98 : vector<16x128xf32>
    %100 = vector.extract_strided_slice %84 {offsets = [48, 0], sizes = [16, 8], strides = [1, 1]} : vector<128x8xbf16> to vector<16x8xbf16>
    %101 = vector.extract_strided_slice %2 {offsets = [3, 0, 0], sizes = [1, 8, 128], strides = [1, 1, 1]} : vector<8x8x128xbf16> to vector<1x8x128xbf16>
    %102 = vector.shape_cast %101 : vector<1x8x128xbf16> to vector<8x128xbf16>
    %cst_34 = arith.constant dense<0.000000e+00> : vector<16x128xf32>
    %103 = tpu.matmul %100, %102, %cst_34 {dimension_numbers = #tpu.dot_dimension_numbers<[1], [0], [0], [1], [0, 0, 1, 1], [], []>} : vector<16x8xbf16>, vector<8x128xbf16>, vector<16x128xf32> -> vector<16x128xf32>
    %104 = arith.addf %99, %103 : vector<16x128xf32>
    %105 = vector.extract_strided_slice %84 {offsets = [64, 0], sizes = [16, 8], strides = [1, 1]} : vector<128x8xbf16> to vector<16x8xbf16>
    %106 = vector.extract_strided_slice %2 {offsets = [4, 0, 0], sizes = [1, 8, 128], strides = [1, 1, 1]} : vector<8x8x128xbf16> to vector<1x8x128xbf16>
    %107 = vector.shape_cast %106 : vector<1x8x128xbf16> to vector<8x128xbf16>
    %cst_35 = arith.constant dense<0.000000e+00> : vector<16x128xf32>
    %108 = tpu.matmul %105, %107, %cst_35 {dimension_numbers = #tpu.dot_dimension_numbers<[1], [0], [0], [1], [0, 0, 1, 1], [], []>} : vector<16x8xbf16>, vector<8x128xbf16>, vector<16x128xf32> -> vector<16x128xf32>
    %109 = arith.addf %104, %108 : vector<16x128xf32>
    %110 = vector.extract_strided_slice %84 {offsets = [80, 0], sizes = [16, 8], strides = [1, 1]} : vector<128x8xbf16> to vector<16x8xbf16>
    %111 = vector.extract_strided_slice %2 {offsets = [5, 0, 0], sizes = [1, 8, 128], strides = [1, 1, 1]} : vector<8x8x128xbf16> to vector<1x8x128xbf16>
    %112 = vector.shape_cast %111 : vector<1x8x128xbf16> to vector<8x128xbf16>
    %cst_36 = arith.constant dense<0.000000e+00> : vector<16x128xf32>
    %113 = tpu.matmul %110, %112, %cst_36 {dimension_numbers = #tpu.dot_dimension_numbers<[1], [0], [0], [1], [0, 0, 1, 1], [], []>} : vector<16x8xbf16>, vector<8x128xbf16>, vector<16x128xf32> -> vector<16x128xf32>
    %114 = arith.addf %109, %113 : vector<16x128xf32>
    %115 = vector.extract_strided_slice %84 {offsets = [96, 0], sizes = [16, 8], strides = [1, 1]} : vector<128x8xbf16> to vector<16x8xbf16>
    %116 = vector.extract_strided_slice %2 {offsets = [6, 0, 0], sizes = [1, 8, 128], strides = [1, 1, 1]} : vector<8x8x128xbf16> to vector<1x8x128xbf16>
    %117 = vector.shape_cast %116 : vector<1x8x128xbf16> to vector<8x128xbf16>
    %cst_37 = arith.constant dense<0.000000e+00> : vector<16x128xf32>
    %118 = tpu.matmul %115, %117, %cst_37 {dimension_numbers = #tpu.dot_dimension_numbers<[1], [0], [0], [1], [0, 0, 1, 1], [], []>} : vector<16x8xbf16>, vector<8x128xbf16>, vector<16x128xf32> -> vector<16x128xf32>
    %119 = arith.addf %114, %118 : vector<16x128xf32>
    %120 = vector.extract_strided_slice %84 {offsets = [112, 0], sizes = [16, 8], strides = [1, 1]} : vector<128x8xbf16> to vector<16x8xbf16>
    %121 = vector.extract_strided_slice %2 {offsets = [7, 0, 0], sizes = [1, 8, 128], strides = [1, 1, 1]} : vector<8x8x128xbf16> to vector<1x8x128xbf16>
    %122 = vector.shape_cast %121 : vector<1x8x128xbf16> to vector<8x128xbf16>
    %cst_38 = arith.constant dense<0.000000e+00> : vector<16x128xf32>
    %123 = tpu.matmul %120, %122, %cst_38 {dimension_numbers = #tpu.dot_dimension_numbers<[1], [0], [0], [1], [0, 0, 1, 1], [], []>} : vector<16x8xbf16>, vector<8x128xbf16>, vector<16x128xf32> -> vector<16x128xf32>
    %124 = arith.addf %119, %123 : vector<16x128xf32>
    %c1_39 = arith.constant 1 : index
    %c0_40 = arith.constant 0 : index
    %c0_41 = arith.constant 0 : index
    %125 = vector.load %arg6[%c1_39, %c0_40, %c0_41] : memref<2x16x128xf32, #tpu.memory_space<vmem>>, vector<1x16x128xf32>
    %126 = vector.shape_cast %125 : vector<1x16x128xf32> to vector<16x128xf32>
    %127 = vector.shape_cast %124 : vector<16x128xf32> to vector<1x16x128xf32>
    tpu.vector_store %arg6[%c1_39, %c0_40, %c0_41], %127 {strides = array<i32>} : memref<2x16x128xf32, #tpu.memory_space<vmem>>, vector<1x16x128xf32>,
    return
  }
  func.func @transform_0(%arg0: i32) -> (i32, i32, i32) {
    %c0_i32 = arith.constant 0 : i32
    %c0_i32_0 = arith.constant 0 : i32
    %c0_i32_1 = arith.constant 0 : i32
    return %arg0, %c0_i32, %c0_i32_0 : i32, i32, i32
  }
  func.func @transform_1(%arg0: i32) -> (i32, i32) {
    %c0_i32 = arith.constant 0 : i32
    %c0_i32_0 = arith.constant 0 : i32
    %c0_i32_1 = arith.constant 0 : i32
    return %c0_i32, %c0_i32_0 : i32, i32
  }
  func.func @transform_2(%arg0: i32) -> (i32, i32) {
    %c0_i32 = arith.constant 0 : i32
    %c0_i32_0 = arith.constant 0 : i32
    %c0_i32_1 = arith.constant 0 : i32
    return %c0_i32, %c0_i32_0 : i32, i32
  }
  func.func @transform_3(%arg0: i32) -> (i32, i32, i32) {
    %c0_i32 = arith.constant 0 : i32
    %c0_i32_0 = arith.constant 0 : i32
    %c0_i32_1 = arith.constant 0 : i32
    %c0_i32_2 = arith.constant 0 : i32
    return %c0_i32, %c0_i32_0, %c0_i32_1 : i32, i32, i32
  }
  func.func @transform_4(%arg0: i32) -> (i32, i32) {
    %c0_i32 = arith.constant 0 : i32
    %c0_i32_0 = arith.constant 0 : i32
    %c0_i32_1 = arith.constant 0 : i32
    return %c0_i32, %c0_i32_0 : i32, i32
  }
  func.func @transform_5(%arg0: i32) -> (i32, i32, i32) {
    %c0_i32 = arith.constant 0 : i32
    %c0_i32_0 = arith.constant 0 : i32
    %c0_i32_1 = arith.constant 0 : i32
    return %arg0, %c0_i32, %c0_i32_0 : i32, i32, i32
  }
}

</mosaic_0001>

<bundles_post_ra>
// kernel: tpu_custom_call.1
= control target key start
LH: loop header
LB: loop body
LE: loop exit
PB: predicated region body
PF: predicated region fallthrough
CT: control target
= control target key end

     0   :  { %vm212_vm0 = vcmask 1043456   ;;  %v1551_v2 = vmov 0   ;;  %vm187_vm1 = vcmask 64512   ;;  %s2117_s0 = inlined_call_operand.vmem [shape: bf16[2,8,8], index: 0, kind: input, shape index: {}]   ;;  %s2118_s1 = inlined_call_operand.vmem [shape: bf16[128,8], index: 1, kind: input, shape index: {}]   ;;  %s2119_s2 = inlined_call_operand.vmem [shape: f32[128,1], index: 2, kind: input, shape index: {}]   ;;  %s2120_s3 = inlined_call_operand.vmem [shape: bf16[8,8,128], index: 3, kind: input, shape index: {}]   ;;  %s2121_s4 = inlined_call_operand.vmem [shape: f32[1,128], index: 4, kind: input, shape index: {}]   ;;  %s2122_s5 = inlined_call_operand.hbm [shape: f32[2,16,128], index: 5, kind: output, shape index: {}]  }
   0x1   :  { %v1588_v0 = vld [vmem:[%s2117_s0] sm:$0xf]  ;;  %1393 = vset.pattern.permute.xlu0 %v1551_v2  ;;  %1394 = vset.pattern.permute.xlu1 %v1551_v2  ;;  %v40_v5 = vld [vmem:[%s2119_s2 + $0x10] sm:$0xff] }
   0x2   :  { %v38_v1 = vld [vmem:[%s2119_s2] sm:$0xff]  ;;  %v214_v3 = vsel %vm212_vm0, %v1588_v0, 0  ;;  %79 = vperm.xlu1 %1394, %v40_v5   ;;  %1395 = vset.pattern.permute.xlu2 %v1551_v2 }
   0x3   :  { %v1598_v4 = vld [vmem:[%s2118_s1] sm:$0xff]  ;;  %223 = vmatpush.bf16.msra.mxu0 %v214_v3  ;;  %69 = vperm.xlu0 %1393, %v38_v1  }
   0x4   :  { %10 = vsyncpa [#allocation3], 0  ;;  %v39_v6 = vld [vmem:[%s2119_s2 + $0x8] sm:$0xff]  ;;  %v41_v9 = vld [vmem:[%s2119_s2 + $0x18] sm:$0xff]  ;;  %v441_v57 = vsel %vm187_vm1, %v1588_v0, 0  ;;  %s1288_s12 = sshll.u32 %s2122_s5, 4  ;;  %s1289_s12 = int_to_ptr.hbm [resolvable:$true] %s1288_s12 }
   0x5   :  { %v47_v7 = vld [vmem:[%s2119_s2 + $0x48] sm:$0xff]  ;;  %v46_v10 = vld [vmem:[%s2119_s2 + $0x40] sm:$0xff]  ;;  %v1627_v11 = vld [vmem:[%s2118_s1 + $0x10] sm:$0xff]  ;;  %450 = vmatpush.bf16.xpose.msra.mxu1 %v441_v57  ;;  %s1553_s13 = smov 128  }
   0x6   :  { %1332 = vmatmul.msk.bf16.vlgmr.msra.gmra.mxu0 %vm187_vm1, %v1598_v4  ;;  %v1614_v8 = vld [vmem:[%s2118_s1 + $0x8] sm:$0xff]  ;;  %v42_v12 = vld [vmem:[%s2119_s2 + $0x20] sm:$0xff]  ;;  %v1640_v14 = vld [vmem:[%s2118_s1 + $0x18] sm:$0xff] }
   0x7   :  { %89 = vperm.xlu2 %1395, %v42_v12   ;;  %v43_v13 = vld [vmem:[%s2119_s2 + $0x28] sm:$0xff]  ;;  %v44_v15 = vld [vmem:[%s2119_s2 + $0x30] sm:$0xff]  ;;  %v45_v16 = vld [vmem:[%s2119_s2 + $0x38] sm:$0xff] }
   0x8   :  { %v1653_v17 = vld [vmem:[%s2118_s1 + $0x20] sm:$0xff]  ;;  %v1660_v18 = vld [vmem:[%s2118_s1 + $0x28] sm:$0xff]  ;;  %v1673_v25 = vld [vmem:[%s2118_s1 + $0x30] sm:$0xff] }
   0x9   :  { %v49_v32 = vld [vmem:[%s2119_s2 + $0x58] sm:$0xff]  ;;  %v48_v37 = vld [vmem:[%s2119_s2 + $0x50] sm:$0xff]  ;;  %v51_v52 = vld [vmem:[%s2119_s2 + $0x68] sm:$0xff] }
   0xa   :  { %84 = vperm.xlu1 %1394, %v41_v9   ;;  %v50_v55 = vld [vmem:[%s2119_s2 + $0x60] sm:$0xff] }
   0xb   :  { %74 = vperm.xlu0 %1393, %v39_v6  }
   0xf   :  { %94 = vperm.xlu2 %1395, %v43_v13  }
  0x12   :  { %109 = vperm.xlu1 %1394, %v46_v10  }
  0x13   :  { %114 = vperm.xlu0 %1393, %v47_v7  }
  0x16   :  { %1333 = vmatmul.msk.bf16.gmra.mxu0 %vm187_vm1, %v1614_v8 }
  0x17   :  { %99 = vperm.xlu2 %1395, %v44_v15  }
  0x1f   :  { %104 = vperm.xlu2 %1395, %v45_v16  }
  0x26   :  { %1334 = vmatmul.msk.bf16.gmra.mxu0 %vm187_vm1, %v1627_v11 }
  0x36   :  { %1335 = vmatmul.msk.bf16.gmra.mxu0 %vm187_vm1, %v1640_v14 }
  0x46   :  { %1336 = vmatmul.msk.bf16.gmra.mxu0 %vm187_vm1, %v1653_v17 }
  0x56   :  { %1337 = vmatmul.msk.bf16.gmra.mxu0 %vm187_vm1, %v1660_v18 }
  0x61   :  { %v1689_v34 = vpop.permute.xlu2 %89 }
  0x66   :  { %1338 = vmatmul.msk.bf16.gmra.mxu0 %vm187_vm1, %v1673_v25 }
  0x69   :  { %v1699_v39 = vpop.permute.xlu2 %94 }
  0x71   :  { %v1703_v43 = vpop.permute.xlu2 %99 }
  0x74   :  { %v1679_v28 = vpop.permute.xlu1 %79 }
  0x75   :  { %v1664_v19 = vpop.permute.xlu0 %69 }
  0x79   :  { %v1717_v51 = vpop.permute.xlu2 %104 }
  0x7c   :  { %v1710_v47 = vpop.permute.xlu1 %84 }
  0x7d   :  { %v1668_v23 = vpop.permute.xlu0 %74 }
  0x83   :  { %v225_v20 = vpop.f32.mrf.mxu0 }
  0x84   :  { %v226_v21 = vadd.f32 %v225_v20, %v1664_v19  ;;  %v1739_v62 = vpop.permute.xlu1 %109 }
  0x85   :  { %v1732_v59 = vpop.permute.xlu0 %114 }
  0x86   :  { %v265_v22 = vsel %vm187_vm1, %v226_v21, -inf }
  0x87   :  { %266 = vmax.xlane.f32.xlu0 %v265_v22 }
  0x8b   :  { %v227_v24 = vpop.f32.mrf.mxu0 }
  0x8c   :  { %v228_v26 = vadd.f32 %v227_v24, %v1668_v23 }
  0x8e   :  { %v268_v27 = vsel %vm187_vm1, %v228_v26, -inf }
  0x8f   :  { %269 = vmax.xlane.f32.xlu1 %v268_v27 }
  0x93   :  { %v230_v29 = vpop.f32.mrf.mxu0 }
  0x94   :  { %v1682_v30 = vadd.f32 %v230_v29, %v1679_v28 }
  0x96   :  { %v271_v31 = vsel %vm187_vm1, %v1682_v30, -inf }
  0x97   :  { %272 = vmax.xlane.f32.xlu2 %v271_v31 }
  0x9b   :  { %v232_v33 = vpop.f32.mrf.mxu0  ;;  %124 = vperm.xlu0 %1393, %v49_v32  }
  0x9c   :  { %v1713_v48 = vadd.f32 %v232_v33, %v1710_v47 }
  0x9e   :  { %v274_v49 = vsel %vm187_vm1, %v1713_v48, -inf }
  0xa3   :  { %v235_v35 = vpop.f32.mrf.mxu0 }
  0xa4   :  { %v1692_v36 = vadd.f32 %v235_v35, %v1689_v34 }
  0xa6   :  { %v277_v38 = vsel %vm187_vm1, %v1692_v36, -inf }
  0xa7   :  { %278 = vmax.xlane.f32.xlu2 %v277_v38 }
  0xa8   :  { %119 = vperm.xlu1 %1394, %v48_v37  }
  0xab   :  { %v237_v40 = vpop.f32.mrf.mxu0 }
  0xac   :  { %v238_v41 = vadd.f32 %v237_v40, %v1699_v39 }
  0xae   :  { %v280_v42 = vsel %vm187_vm1, %v238_v41, -inf }
  0xaf   :  { %281 = vmax.xlane.f32.xlu2 %v280_v42 }
  0xb3   :  { %v240_v44 = vpop.f32.mrf.mxu0 }
  0xb4   :  { %v1706_v45 = vadd.f32 %v240_v44, %v1703_v43 }
  0xb6   :  { %v283_v46 = vsel %vm187_vm1, %v1706_v45, -inf }
  0xb7   :  { %284 = vmax.xlane.f32.xlu2 %v283_v46 }
  0xbb   :  { %v242_v50 = vpop.f32.mrf.mxu0 }
  0xbc   :  { %v1723_v53 = vadd.f32 %v242_v50, %v1717_v51 }
  0xbe   :  { %v286_v54 = vsel %vm187_vm1, %v1723_v53, -inf }
  0xc3   :  { %v245_v56 = vpop.f32.mrf.mxu0 }
  0xc4   :  { %v1742_v1 = vadd.f32 %v245_v56, %v1739_v62 }
  0xc5   :  { %275 = vmax.xlane.f32.xlu0 %v274_v49 }
  0xc6   :  { %v289_v5 = vsel %vm187_vm1, %v1742_v1, -inf }
  0xcb   :  { %v247_v58 = vpop.f32.mrf.mxu0 }
  0xcc   :  { %v1735_v60 = vadd.f32 %v247_v58, %v1732_v59 }
  0xce   :  { %v292_v61 = vsel %vm187_vm1, %v1735_v60, -inf }
  0xcf   :  { %134 = vperm.xlu2 %1395, %v51_v52  }
  0xd2   :  { %287 = vmax.xlane.f32.xlu1 %v286_v54 }
  0xd3   :  { %v250_v15 = vpop.f32.mrf.mxu0 }
  0xd9   :  { %129 = vperm.xlu0 %1393, %v50_v55  }
  0xdb   :  { %v252_v24 = vpop.f32.mrf.mxu0 }
  0xe3   :  { %v255_v35 = vpop.f32.mrf.mxu0 }
  0xeb   :  { %v257_v42 = vpop.f32.mrf.mxu0 }
  0xf8   :  { %293 = vmax.xlane.f32.xlu2 %v292_v61 }
  0xfa   :  { %v267_v63 = vpop.xlane.xlu0 %266 }
  0xfb   :  { %v313_v2 = vsub.f32 %v226_v21, %v267_v63 }
  0xfd   :  { %v329_v3 = vmul.f32 1.442695, %v313_v2 }
  0xff   :  { %1397 = vpow2.f32 %v329_v3 }
 0x102   :  { %v270_v0 = vpop.xlane.xlu1 %269 }
 0x103   :  { %v314_v6 = vsub.f32 %v228_v26, %v270_v0  ;;  %290 = vmax.xlane.f32.xlu0 %v289_v5 }
 0x105   :  { %v331_v7 = vmul.f32 1.442695, %v314_v6  ;;  %v1398_v9 = vpop.eup %1397 }
 0x107   :  { %1399 = vpow2.f32 %v331_v7 }
 0x10a   :  { %v273_v13 = vpop.xlane.xlu2 %272 }
 0x10d   :  { %v1400_v10 = vpop.eup %1399  ;;  %v1754_v26 = vpop.permute.xlu0 %124 }
 0x10e   :  { %v409_v12 = vpack.c.bf16 %v1400_v10, %v1398_v9  ;;  %v1757_v27 = vadd.f32 %v252_v24, %v1754_v26  ;;  %v364_v56 = vsel %vm187_vm1, %v1400_v10, 0.0  ;;  %v361_v10 = vsel %vm187_vm1, %v1398_v9, 0.0 }
 0x110   :  { %1340 = vmatmul.msk.bf16.vlgmr.msra.gmra.mxu1 %vm187_vm1, %v409_v12  ;;  %v298_v33 = vsel %vm187_vm1, %v1757_v27, -inf }
 0x11a   :  { %v279_v16 = vpop.xlane.xlu2 %278  ;;  %v1747_v20 = vpop.permute.xlu1 %119 }
 0x11b   :  { %v1750_v21 = vadd.f32 %v250_v15, %v1747_v20  ;;  %v317_v61 = vsub.f32 %v1692_v36, %v279_v16  ;;  %v1794_v15 = vld [vmem:[%s2118_s1 + $0x38] sm:$0xff]  ;;  %s1554_s1 = smov 8  }
 0x11c   :  { %1339 = vmatmul.msk.bf16.gmra.mxu0 %vm187_vm1, %v1794_v15 }
 0x11d   :  { %v295_v22 = vsel %vm187_vm1, %v1750_v21, -inf  ;;  %v337_v63 = vmul.f32 1.442695, %v317_v61 }
 0x11e   :  { %296 = vmax.xlane.f32.xlu1 %v295_v22 }
 0x122   :  { %v282_v29 = vpop.xlane.xlu2 %281 }
 0x123   :  { %v318_v31 = vsub.f32 %v238_v41, %v282_v29  ;;  %v315_v41 = vsub.f32 %v1682_v30, %v273_v13 }
 0x125   :  { %v339_v32 = vmul.f32 1.442695, %v318_v31  ;;  %v333_v50 = vmul.f32 1.442695, %v315_v41 }
 0x126   :  { %299 = vmax.xlane.f32.xlu1 %v298_v33 }
 0x127   :  { %1401 = vpow2.f32 %v339_v32 }
 0x128   :  { %1403 = vpow2.f32 %v333_v50 }
 0x12a   :  { %v285_v37 = vpop.xlane.xlu2 %284 }
 0x12b   :  { %v319_v36 = vsub.f32 %v1706_v45, %v285_v37 }
 0x12d   :  { %v1402_v38 = vpop.eup %1401  ;;  %v341_v13 = vmul.f32 1.442695, %v319_v36 }
 0x12e   :  { %v376_v40 = vsel %vm187_vm1, %v1402_v38, 0.0  ;;  %v1772_v57 = vpop.eup %1403 }
 0x12f   :  { %377 = vadd.xlane.f32.xlu2 %v376_v40 }
 0x132   :  { %v1762_v44 = vpop.permute.xlu2 %134 }
 0x133   :  { %v1765_v46 = vadd.f32 %v257_v42, %v1762_v44 }
 0x135   :  { %v304_v49 = vsel %vm187_vm1, %v1765_v46, -inf }
 0x136   :  { %305 = vmax.xlane.f32.xlu1 %v304_v49 }
 0x138   :  { %v276_v52 = vpop.xlane.xlu0 %275 }
 0x139   :  { %v316_v54 = vsub.f32 %v1713_v48, %v276_v52 }
 0x13b   :  { %v335_v55 = vmul.f32 1.442695, %v316_v54 }
 0x13d   :  { %1405 = vpow2.f32 %v335_v55 }
 0x13e   :  { %365 = vadd.xlane.f32.xlu1 %v364_v56  ;;  %1407 = vpow2.f32 %v337_v63 }
 0x143   :  { %v1774_v58 = vpop.eup %1405 }
 0x144   :  { %v410_v30 = vpack.c.bf16 %v1774_v58, %v1772_v57  ;;  %v1408_v5 = vpop.eup %1407 }
 0x145   :  { %v288_v0 = vpop.xlane.xlu1 %287  ;;  %v411_v7 = vpack.c.bf16 %v1402_v38, %v1408_v5 }
 0x146   :  { %1341 = vmatmul.msk.bf16.gmra.mxu1 %vm187_vm1, %v410_v30  ;;  %v320_v6 = vsub.f32 %v1723_v53, %v288_v0  ;;  %v373_v53 = vsel %vm187_vm1, %v1408_v5, 0.0 }
 0x148   :  { %v343_v12 = vmul.f32 1.442695, %v320_v6  ;;  %v54_v6 = vld [vmem:[%s2120_s3] sm:$0xf] }
 0x14a   :  { %1409 = vpow2.f32 %v343_v12 }
 0x14b   :  { %v1780_v2 = vpop.permute.xlu0 %129  ;;  %1411 = vpow2.f32 %v341_v13 }
 0x14c   :  { %v1783_v48 = vadd.f32 %v255_v35, %v1780_v2 }
 0x14e   :  { %v301_v3 = vsel %vm187_vm1, %v1783_v48, -inf }
 0x14f   :  { %302 = vmax.xlane.f32.xlu0 %v301_v3 }
 0x150   :  { %v1799_v45 = vpop.eup %1409 }
 0x151   :  { %v1801_v16 = vpop.eup %1411 }
 0x152   :  { %v412_v9 = vpack.c.bf16 %v1799_v45, %v1801_v16 }
 0x156   :  { %1342 = vmatmul.msk.bf16.gmra.mxu1 %vm187_vm1, %v411_v7  ;;  %v549_v7 = vsel %vm212_vm0, %v54_v6, 0 }
 0x157   :  { %362 = vadd.xlane.f32.xlu0 %v361_v10  ;;  %558 = vmatpush.bf16.msra.mxu2 %v549_v7 }
 0x158   :  { %1102 = vmatpush.bf16.msrb.mxu0 %v549_v7  ;;  %v58_v7 = vld [vmem:[%s2120_s3 + $0x10] sm:$0xf] }
 0x15f   :  { %374 = vadd.xlane.f32.xlu0 %v373_v53 }
 0x166   :  { %1343 = vmatmul.msk.bf16.gmra.mxu1 %vm187_vm1, %v412_v9 }
 0x16b   :  { %v294_v22 = vpop.xlane.xlu2 %293 }
 0x16c   :  { %v322_v24 = vsub.f32 %v1735_v60, %v294_v22  ;;  %v52_v60 = vld [vmem:[%s2119_s2 + $0x70] sm:$0xff] }
 0x16e   :  { %v347_v29 = vmul.f32 1.442695, %v322_v24 }
 0x170   :  { %1413 = vpow2.f32 %v347_v29 }
 0x176   :  { %v1414_v31 = vpop.eup %1413  ;;  %v291_v32 = vpop.xlane.xlu0 %290 }
 0x177   :  { %v321_v33 = vsub.f32 %v1742_v1, %v291_v32  ;;  %v388_v35 = vsel %vm187_vm1, %v1414_v31, 0.0 }
 0x178   :  { %389 = vadd.xlane.f32.xlu0 %v388_v35 }
 0x179   :  { %v345_v37 = vmul.f32 1.442695, %v321_v33 }
 0x17b   :  { %1415 = vpow2.f32 %v345_v37 }
 0x181   :  { %v1416_v38 = vpop.eup %1415 }
 0x182   :  { %v385_v40 = vsel %vm187_vm1, %v1416_v38, 0.0  ;;  %v413_v42 = vpack.c.bf16 %v1414_v31, %v1416_v38 }
 0x183   :  { %386 = vadd.xlane.f32.xlu1 %v385_v40 }
 0x184   :  { %1344 = vmatmul.msk.bf16.gmra.mxu1 %vm187_vm1, %v413_v42 }
 0x18c   :  { %139 = vperm.xlu0 %1393, %v52_v60  }
 0x18d   :  { %v452_v3 = vpop.f32.mrf.mxu1 }
 0x191   :  { %v297_v41 = vpop.xlane.xlu1 %296 }
 0x192   :  { %v323_v1 = vsub.f32 %v1750_v21, %v297_v41 }
 0x194   :  { %v349_v49 = vmul.f32 1.442695, %v323_v1 }
 0x196   :  { %1417 = vpow2.f32 %v349_v49 }
 0x199   :  { %v300_v50 = vpop.xlane.xlu1 %299 }
 0x19a   :  { %v324_v52 = vsub.f32 %v1757_v27, %v300_v50  ;;  %v367_v27 = vsel %vm187_vm1, %v1772_v57, 0.0  ;;  %v56_v57 = vld [vmem:[%s2120_s3 + $0x8] sm:$0xf] }
 0x19b   :  { %v603_v53 = vsel %vm212_vm0, %v56_v57, 0 }
 0x19c   :  { %v351_v54 = vmul.f32 1.442695, %v324_v52  ;;  %v1816_v55 = vpop.eup %1417  ;;  %612 = vmatpush.bf16.msrb.mxu2 %v603_v53  ;;  %1150 = vmatpush.bf16.msra.mxu0 %v603_v53  ;;  %v260_v53 = vpop.f32.mrf.mxu0 }
 0x19e   :  { %1419 = vpow2.f32 %v351_v54 }
 0x1a2   :  { %v378_v37 = vpop.xlane.xlu2 %377 }
 0x1a4   :  { %v1818_v56 = vpop.eup %1419 }
 0x1a5   :  { %v414_v30 = vpack.c.bf16 %v1818_v56, %v1816_v55 }
 0x1a7   :  { %1345 = vmatmul.msk.bf16.gmra.mxu1 %vm187_vm1, %v414_v30 }
 0x1a9   :  { %v306_v61 = vpop.xlane.xlu1 %305 }
 0x1aa   :  { %v326_v63 = vsub.f32 %v1765_v46, %v306_v61  ;;  %v454_v46 = vpop.f32.mrf.mxu1 }
 0x1ac   :  { %v355_v21 = vmul.f32 1.442695, %v326_v63 }
 0x1ae   :  { %1421 = vpow2.f32 %v355_v21 }
 0x1b1   :  { %v366_v36 = vpop.xlane.xlu1 %365 }
 0x1b2   :  { %1423 = vrcp.f32 %v366_v36 }
 0x1b4   :  { %v1422_v0 = vpop.eup %1421 }
 0x1b5   :  { %v400_v5 = vsel %vm187_vm1, %v1422_v0, 0.0 }
 0x1b6   :  { %368 = vadd.xlane.f32.xlu0 %v367_v27  ;;  %401 = vadd.xlane.f32.xlu1 %v400_v5 }
 0x1b8   :  { %v1424_v24 = vpop.eup %1423 }
 0x1b9   :  { %v509_v33 = vmul.f32 %v1424_v24, %v454_v46  ;;  %v1851_v46 = vsel %vm212_vm0, %v58_v7, 0 }
 0x1bb   :  { %v525_v42 = vpack.c.bf16 %v509_v33, %v509_v33 }
 0x1bd   :  { %v543_v49 = vunpack.c.l.b16 %v525_v42 }
 0x1c2   :  { %v303_v10 = vpop.xlane.xlu0 %302 }
 0x1c3   :  { %v325_v12 = vsub.f32 %v1783_v48, %v303_v10  ;;  %v1832_v13 = vpop.f32.mrf.mxu1 }
 0x1c5   :  { %v353_v9 = vmul.f32 1.442695, %v325_v12 }
 0x1c7   :  { %1425 = vpow2.f32 %v353_v9 }
 0x1ca   :  { %v363_v22 = vpop.xlane.xlu0 %362 }
 0x1cb   :  { %1427 = vrcp.f32 %v363_v22  ;;  %v1838_v29 = vpop.f32.mrf.mxu1 }
 0x1cc   :  { %1429 = vrcp.f32 %v378_v37 }
 0x1cd   :  { %v1426_v31 = vpop.eup %1425 }
 0x1ce   :  { %v397_v48 = vsel %vm187_vm1, %v1426_v31, 0.0  ;;  %v415_v32 = vpack.c.bf16 %v1422_v0, %v1426_v31 }
 0x1cf   :  { %398 = vadd.xlane.f32.xlu2 %v397_v48 }
 0x1d0   :  { %1346 = vmatmul.msk.bf16.gmra.mxu1 %vm187_vm1, %v415_v32 }
 0x1d1   :  { %v1428_v35 = vpop.eup %1427 }
 0x1d2   :  { %v375_v38 = vpop.xlane.xlu0 %374  ;;  %v508_v40 = vmul.f32 %v1428_v35, %v452_v3  ;;  %v1430_v52 = vpop.eup %1429  ;;  %v53_v3 = vld [vmem:[%s2119_s2 + $0x78] sm:$0xff] }
 0x1d3   :  { %v462_v60 = vpop.f32.mrf.mxu1  ;;  %1431 = vrcp.f32 %v375_v38 }
 0x1d4   :  { %v524_v41 = vpack.c.bf16 %v508_v40, %v508_v40 }
 0x1d6   :  { %v542_v1 = vunpack.c.l.b16 %v524_v41  ;;  %v379_v41 = vsel %vm187_vm1, %v1801_v16, 0.0 }
 0x1d8   :  { %v544_v50 = vpack.c.b16 %v543_v49, %v542_v1  ;;  %v60_v49 = vld [vmem:[%s2120_s3 + $0x18] sm:$0xf] }
 0x1d9   :  { %v1432_v54 = vpop.eup %1431 }
 0x1da   :  { %1348 = vmatmul.msk.bf16.vlgmr.msra.gmra.mxu2 %vm187_vm1, %v544_v50  ;;  %v512_v63 = vmul.f32 %v1432_v54, %v462_v60  ;;  %v1869_v50 = vsel %vm212_vm0, %v60_v49, 0  ;;  %v1877_v54 = vld [vmem:[%s2117_s0 + $0x4] sm:$0xf]  ;;  %v57_v49 = vld [vmem:[%s2120_s3 + $0xc] sm:$0xf] }
 0x1db   :  { %v464_v30 = vpop.f32.mrf.mxu1  ;;  %666 = vmatpush.bf16.msra.mxu2 %v1851_v46  ;;  %v761_v16 = vsel %vm212_vm0, %v1877_v54, 0 }
 0x1dc   :  { %v513_v61 = vmul.f32 %v1430_v52, %v464_v30  ;;  %v528_v0 = vpack.c.bf16 %v512_v63, %v512_v63  ;;  %v262_v63 = vpop.f32.mrf.mxu0 }
 0x1de   :  { %v529_v21 = vpack.c.bf16 %v513_v61, %v513_v61  ;;  %v596_v5 = vunpack.c.l.b16 %v528_v0 }
 0x1e0   :  { %v597_v27 = vunpack.c.l.b16 %v529_v21 }
 0x1e2   :  { %v598_v6 = vpack.c.b16 %v597_v27, %v596_v5 }
 0x1e3   :  { %v1853_v36 = vpop.f32.mrf.mxu1 }
 0x1e7   :  { %144 = vperm.xlu2 %1395, %v53_v3  }
 0x1ea   :  { %1350 = vmatmul.msk.bf16.vlgmr.msrb.gmra.mxu2 %vm187_vm1, %v598_v6 }
 0x1eb   :  { %v390_v10 = vpop.xlane.xlu0 %389  ;;  %v1856_v12 = vpop.f32.mrf.mxu1  ;;  %720 = vmatpush.bf16.msrb.mxu2 %v1869_v50 }
 0x1f6   :  { %v387_v57 = vpop.xlane.xlu1 %386 }
 0x1f7   :  { %1433 = vrcp.f32 %v387_v57 }
 0x1f8   :  { %1435 = vrcp.f32 %v390_v10 }
 0x1fd   :  { %v1434_v48 = vpop.eup %1433 }
 0x1fe   :  { %v1858_v9 = vpop.permute.xlu0 %139  ;;  %v1436_v33 = vpop.eup %1435 }
 0x1ff   :  { %v261_v22 = vadd.f32 %v260_v53, %v1858_v9  ;;  %v370_v53 = vsel %vm187_vm1, %v1774_v58, 0.0  ;;  %v394_v58 = vsel %vm187_vm1, %v1818_v56, 0.0 }
 0x201   :  { %v472_v24 = vpop.f32.mrf.mxu1  ;;  %v307_v31 = vsel %vm187_vm1, %v261_v22, -inf }
 0x202   :  { %308 = vmax.xlane.f32.xlu1 %v307_v31  ;;  %v516_v32 = vmul.f32 %v1434_v48, %v472_v24 }
 0x204   :  { %v532_v37 = vpack.c.bf16 %v516_v32, %v516_v32 }
 0x206   :  { %v650_v42 = vunpack.c.l.b16 %v532_v37  ;;  %v382_v37 = vsel %vm187_vm1, %v1799_v45, 0.0 }
 0x209   :  { %v474_v35 = vpop.f32.mrf.mxu1 }
 0x20a   :  { %v517_v38 = vmul.f32 %v1436_v33, %v474_v35 }
 0x20c   :  { %v533_v40 = vpack.c.bf16 %v517_v38, %v517_v38  ;;  %v391_v38 = vsel %vm187_vm1, %v1816_v55, 0.0 }
 0x20e   :  { %v651_v60 = vunpack.c.l.b16 %v533_v40 }
 0x210   :  { %v652_v1 = vpack.c.b16 %v651_v60, %v650_v42  ;;  %380 = vadd.xlane.f32.xlu2 %v379_v41 }
 0x212   :  { %1352 = vmatmul.msk.bf16.vlgmr.msra.gmra.mxu2 %vm187_vm1, %v652_v1 }
 0x213   :  { %770 = vmatpush.bf16.msra.mxu2 %v761_v16  ;;  %v630_v16 = vsel %vm212_vm0, %v57_v49, 0 }
 0x224   :  { %v1872_v52 = vpop.f32.mrf.mxu1 }
 0x229   :  { %v402_v27 = vpop.xlane.xlu1 %401 }
 0x22c   :  { %v1881_v61 = vpop.f32.mrf.mxu1 }
 0x242   :  { %v399_v30 = vpop.xlane.xlu2 %398 }
 0x243   :  { %1437 = vrcp.f32 %v399_v30 }
 0x244   :  { %1439 = vrcp.f32 %v402_v27 }
 0x249   :  { %v1438_v6 = vpop.eup %1437 }
 0x24a   :  { %v1883_v21 = vpop.permute.xlu2 %144  ;;  %v1440_v10 = vpop.eup %1439 }
 0x24b   :  { %v263_v0 = vadd.f32 %v262_v63, %v1883_v21 }
 0x24d   :  { %v482_v3 = vpop.f32.mrf.mxu1  ;;  %v310_v5 = vsel %vm187_vm1, %v263_v0, -inf }
 0x24e   :  { %311 = vmax.xlane.f32.xlu1 %v310_v5  ;;  %v520_v7 = vmul.f32 %v1438_v6, %v482_v3 }
 0x250   :  { %v536_v24 = vpack.c.bf16 %v520_v7, %v520_v7 }
 0x252   :  { %v704_v32 = vunpack.c.l.b16 %v536_v24 }
 0x255   :  { %v484_v57 = vpop.f32.mrf.mxu1 }
 0x256   :  { %v521_v31 = vmul.f32 %v1440_v10, %v484_v57  ;;  %371 = vadd.xlane.f32.xlu1 %v370_v53 }
 0x258   :  { %v537_v48 = vpack.c.bf16 %v521_v31, %v521_v31 }
 0x25a   :  { %v705_v33 = vunpack.c.l.b16 %v537_v48 }
 0x25c   :  { %v706_v35 = vpack.c.b16 %v705_v33, %v704_v32 }
 0x25d   :  { %v1905_v55 = vpop.f32.mrf.mxu2 }
 0x25e   :  { %1354 = vmatmul.msk.bf16.vlgmr.msrb.gmra.mxu2 %vm187_vm1, %v706_v35  ;;  %383 = vadd.xlane.f32.xlu1 %v382_v37 }
 0x266   :  { %392 = vadd.xlane.f32.xlu1 %v391_v38 }
 0x26e   :  { %1357 = vmatmul.msk.bf16.vlgmr.msra.gmra.mxu2 %vm187_vm1, %v1598_v4  ;;  %395 = vadd.xlane.f32.xlu1 %v394_v58  ;;  %v1909_v4 = vpop.f32.mrf.mxu2 }
 0x275   :  { %v309_v40 = vpop.xlane.xlu1 %308 }
 0x276   :  { %v327_v42 = vsub.f32 %v261_v22, %v309_v40  ;;  %v1915_v22 = vpop.f32.mrf.mxu2 }
 0x278   :  { %v357_v60 = vmul.f32 1.442695, %v327_v42 }
 0x27a   :  { %1441 = vpow2.f32 %v357_v60 }
 0x27e   :  { %1358 = vmatmul.msk.bf16.gmra.mxu2 %vm187_vm1, %v1614_v8  ;;  %v55_v8 = vld [vmem:[%s2120_s3 + $0x4] sm:$0xf]  ;;  %v1923_v30 = vpop.f32.mrf.mxu2 }
 0x27f   :  { %v576_v56 = vsel %vm212_vm0, %v55_v8, 0 }
 0x280   :  { %v1442_v45 = vpop.eup %1441  ;;  %585 = vmatpush.bf16.msra.mxu3 %v576_v56  ;;  %1126 = vmatpush.bf16.msrb.mxu1 %v576_v56 }
 0x281   :  { %v403_v41 = vsel %vm187_vm1, %v1442_v45, 0.0 }
 0x282   :  { %404 = vadd.xlane.f32.xlu1 %v403_v41 }
 0x283   :  { %v381_v10 = vpop.xlane.xlu2 %380 }
 0x284   :  { %639 = vmatpush.bf16.msrb.mxu3 %v630_v16  ;;  %1174 = vmatpush.bf16.msra.mxu1 %v630_v16 }
 0x28e   :  { %1359 = vmatmul.msk.bf16.gmra.mxu2 %vm187_vm1, %v1627_v11  ;;  %v369_v11 = vpop.xlane.xlu0 %368 }
 0x28f   :  { %1443 = vrcp.f32 %v369_v11 }
 0x295   :  { %v1444_v27 = vpop.eup %1443  ;;  %v1929_v6 = vpop.f32.mrf.mxu2 }
 0x296   :  { %v510_v5 = vmul.f32 %v1444_v27, %v1832_v13 }
 0x298   :  { %v526_v24 = vpack.c.bf16 %v510_v5, %v510_v5 }
 0x29a   :  { %v569_v48 = vunpack.c.l.b16 %v526_v24 }
 0x29d   :  { %v1939_v37 = vpop.f32.mrf.mxu2 }
 0x29e   :  { %1360 = vmatmul.msk.bf16.gmra.mxu2 %vm187_vm1, %v1640_v14 }
 0x2ae   :  { %1361 = vmatmul.msk.bf16.gmra.mxu2 %vm187_vm1, %v1653_v17 }
 0x2be   :  { %1362 = vmatmul.msk.bf16.gmra.mxu2 %vm187_vm1, %v1660_v18 }
 0x2c1   :  { %v312_v14 = vpop.xlane.xlu1 %311 }
 0x2c2   :  { %v328_v1 = vsub.f32 %v263_v0, %v312_v14 }
 0x2c4   :  { %v359_v17 = vmul.f32 1.442695, %v328_v1 }
 0x2c6   :  { %1445 = vpow2.f32 %v359_v17 }
 0x2c9   :  { %v372_v63 = vpop.xlane.xlu1 %371 }
 0x2ca   :  { %1447 = vrcp.f32 %v372_v63 }
 0x2cc   :  { %v1446_v18 = vpop.eup %1445 }
 0x2cd   :  { %v406_v3 = vsel %vm187_vm1, %v1446_v18, 0.0  ;;  %v416_v0 = vpack.c.bf16 %v1446_v18, %v1442_v45 }
 0x2ce   :  { %1363 = vmatmul.msk.bf16.gmra.mxu2 %vm187_vm1, %v1673_v25  ;;  %407 = vadd.xlane.f32.xlu1 %v406_v3  ;;  %v59_v25 = vld [vmem:[%s2120_s3 + $0x14] sm:$0xf] }
 0x2cf   :  { %1347 = vmatmul.msk.bf16.gmra.mxu1 %vm187_vm1, %v416_v0  ;;  %v1937_v33 = vsel %vm212_vm0, %v59_v25, 0 }
 0x2d0   :  { %v1448_v7 = vpop.eup %1447 }
 0x2d1   :  { %v384_v57 = vpop.xlane.xlu1 %383  ;;  %v511_v53 = vmul.f32 %v1448_v7, %v1838_v29 }
 0x2d2   :  { %1449 = vrcp.f32 %v384_v57 }
 0x2d3   :  { %v527_v31 = vpack.c.bf16 %v511_v53, %v511_v53  ;;  %1451 = vrcp.f32 %v381_v10 }
 0x2d5   :  { %v570_v32 = vunpack.c.l.b16 %v527_v31 }
 0x2d7   :  { %v571_v13 = vpack.c.b16 %v570_v32, %v569_v48 }
 0x2d8   :  { %v1450_v35 = vpop.eup %1449 }
 0x2d9   :  { %v393_v38 = vpop.xlane.xlu1 %392  ;;  %1349 = vmatmul.msk.bf16.vlgmr.msra.gmra.mxu3 %vm187_vm1, %v571_v13  ;;  %v1452_v29 = vpop.eup %1451  ;;  %v515_v58 = vmul.f32 %v1450_v35, %v1856_v12 }
 0x2da   :  { %693 = vmatpush.bf16.msra.mxu3 %v1937_v33  ;;  %v514_v40 = vmul.f32 %v1452_v29, %v1853_v36 }
 0x2db   :  { %v531_v42 = vpack.c.bf16 %v515_v58, %v515_v58 }
 0x2dc   :  { %v530_v60 = vpack.c.bf16 %v514_v40, %v514_v40 }
 0x2dd   :  { %v624_v8 = vunpack.c.l.b16 %v531_v42  ;;  %v61_v42 = vld [vmem:[%s2120_s3 + $0x1c] sm:$0xf] }
 0x2de   :  { %1364 = vmatmul.msk.bf16.gmra.mxu2 %vm187_vm1, %v1794_v15  ;;  %v623_v56 = vunpack.c.l.b16 %v530_v60  ;;  %v2007_v60 = vsel %vm212_vm0, %v61_v42, 0 }
 0x2e0   :  { %v625_v11 = vpack.c.b16 %v624_v8, %v623_v56 }
 0x2e1   :  { %v1947_v45 = vpop.f32.mrf.mxu2  ;;  %v396_v41 = vpop.xlane.xlu1 %395 }
 0x2e2   :  { %1453 = vrcp.f32 %v396_v41 }
 0x2e3   :  { %1455 = vrcp.f32 %v393_v38 }
 0x2e8   :  { %v1454_v14 = vpop.eup %1453 }
 0x2e9   :  { %1351 = vmatmul.msk.bf16.vlgmr.msrb.gmra.mxu3 %vm187_vm1, %v625_v11  ;;  %v1950_v1 = vpop.f32.mrf.mxu2  ;;  %v1456_v12 = vpop.eup %1455  ;;  %v519_v36 = vmul.f32 %v1454_v14, %v1881_v61 }
 0x2ea   :  { %v518_v15 = vmul.f32 %v1456_v12, %v1872_v52  ;;  %747 = vmatpush.bf16.msrb.mxu3 %v2007_v60 }
 0x2eb   :  { %v535_v17 = vpack.c.bf16 %v519_v36, %v519_v36 }
 0x2ec   :  { %v534_v49 = vpack.c.bf16 %v518_v15, %v518_v15 }
 0x2ed   :  { %v678_v27 = vunpack.c.l.b16 %v535_v17 }
 0x2ee   :  { %v677_v3 = vunpack.c.l.b16 %v534_v49 }
 0x2f0   :  { %v679_v0 = vpack.c.b16 %v678_v27, %v677_v3 }
 0x2f1   :  { %v772_v16 = vpop.f32.mrf.mxu2 }
 0x2f2   :  { %v1955_v63 = vadd.f32 %v772_v16, %v1664_v19 }
 0x2f4   :  { %v812_v18 = vsel %vm187_vm1, %v1955_v63, -inf }
 0x2f5   :  { %813 = vmax.xlane.f32.xlu0 %v812_v18  ;;  %v405_v56 = vpop.xlane.xlu1 %404 }
 0x2f6   :  { %1457 = vrcp.f32 %v405_v56 }
 0x2f9   :  { %1353 = vmatmul.msk.bf16.vlgmr.msra.gmra.mxu3 %vm187_vm1, %v679_v0  ;;  %v774_v5 = vpop.f32.mrf.mxu2 }
 0x2fa   :  { %v1961_v61 = vadd.f32 %v774_v5, %v1668_v23 }
 0x2fc   :  { %v815_v52 = vsel %vm187_vm1, %v1961_v61, -inf  ;;  %v1458_v17 = vpop.eup %1457 }
 0x2fd   :  { %816 = vmax.xlane.f32.xlu2 %v815_v52 }
 0x301   :  { %v777_v7 = vpop.f32.mrf.mxu2 }
 0x302   :  { %v1966_v19 = vadd.f32 %v777_v7, %v1679_v28 }
 0x304   :  { %v818_v10 = vsel %vm187_vm1, %v1966_v19, -inf }
 0x305   :  { %819 = vmax.xlane.f32.xlu1 %v818_v10 }
 0x309   :  { %v779_v57 = vpop.f32.mrf.mxu2 }
 0x30a   :  { %v1971_v53 = vadd.f32 %v779_v57, %v1710_v47 }
 0x30c   :  { %v821_v23 = vsel %vm187_vm1, %v1971_v53, -inf }
 0x30d   :  { %822 = vmax.xlane.f32.xlu0 %v821_v23 }
 0x311   :  { %v782_v24 = vpop.f32.mrf.mxu2 }
 0x312   :  { %v1976_v31 = vadd.f32 %v782_v24, %v1689_v34 }
 0x314   :  { %v824_v28 = vsel %vm187_vm1, %v1976_v31, -inf }
 0x315   :  { %825 = vmax.xlane.f32.xlu2 %v824_v28 }
 0x319   :  { %v784_v48 = vpop.f32.mrf.mxu2 }
 0x31a   :  { %v1981_v32 = vadd.f32 %v784_v48, %v1699_v39 }
 0x31c   :  { %v827_v47 = vsel %vm187_vm1, %v1981_v32, -inf }
 0x31d   :  { %828 = vmax.xlane.f32.xlu1 %v827_v47 }
 0x321   :  { %v787_v25 = vpop.f32.mrf.mxu2 }
 0x322   :  { %v1986_v13 = vadd.f32 %v787_v25, %v1703_v43 }
 0x324   :  { %v830_v34 = vsel %vm187_vm1, %v1986_v13, -inf }
 0x325   :  { %831 = vmax.xlane.f32.xlu0 %v830_v34 }
 0x329   :  { %v789_v35 = vpop.f32.mrf.mxu2 }
 0x32a   :  { %v1991_v38 = vadd.f32 %v789_v35, %v1717_v51 }
 0x32c   :  { %v833_v39 = vsel %vm187_vm1, %v1991_v38, -inf }
 0x32d   :  { %834 = vmax.xlane.f32.xlu2 %v833_v39 }
 0x331   :  { %v792_v29 = vpop.f32.mrf.mxu2 }
 0x332   :  { %v1996_v58 = vadd.f32 %v792_v29, %v1739_v62 }
 0x334   :  { %v836_v43 = vsel %vm187_vm1, %v1996_v58, -inf }
 0x335   :  { %837 = vmax.xlane.f32.xlu1 %v836_v43 }
 0x339   :  { %v794_v40 = vpop.f32.mrf.mxu2 }
 0x33a   :  { %v2004_v51 = vadd.f32 %v794_v40, %v1732_v59 }
 0x33c   :  { %v839_v62 = vsel %vm187_vm1, %v2004_v51, -inf }
 0x33d   :  { %840 = vmax.xlane.f32.xlu0 %v839_v62 }
 0x341   :  { %v797_v41 = vpop.f32.mrf.mxu2  ;;  %v408_v12 = vpop.xlane.xlu1 %407 }
 0x342   :  { %v2013_v8 = vadd.f32 %v797_v41, %v1747_v20  ;;  %v988_v20 = vsel %vm187_vm1, %v1877_v54, 0  ;;  %1459 = vrcp.f32 %v408_v12 }
 0x343   :  { %997 = vmatpush.bf16.xpose.msra.mxu3 %v988_v20 }
 0x344   :  { %v842_v11 = vsel %vm187_vm1, %v2013_v8, -inf }
 0x345   :  { %843 = vmax.xlane.f32.xlu2 %v842_v11 }
 0x348   :  { %v1460_v18 = vpop.eup %1459 }
 0x349   :  { %v799_v59 = vpop.f32.mrf.mxu2 }
 0x34a   :  { %v2018_v14 = vadd.f32 %v799_v59, %v1754_v26 }
 0x34c   :  { %v487_v36 = vpop.f32.mrf.mxu1  ;;  %v845_v15 = vsel %vm187_vm1, %v2018_v14, -inf }
 0x34d   :  { %846 = vmax.xlane.f32.xlu1 %v845_v15  ;;  %v522_v49 = vmul.f32 %v1458_v17, %v487_v36 }
 0x34f   :  { %v538_v0 = vpack.c.bf16 %v522_v49, %v522_v49 }
 0x351   :  { %v802_v16 = vpop.f32.mrf.mxu2  ;;  %v731_v7 = vunpack.c.l.b16 %v538_v0 }
 0x352   :  { %v2025_v27 = vadd.f32 %v802_v16, %v1780_v2 }
 0x354   :  { %v489_v26 = vpop.f32.mrf.mxu1  ;;  %v848_v3 = vsel %vm187_vm1, %v2025_v27, -inf }
 0x355   :  { %v523_v5 = vmul.f32 %v1460_v18, %v489_v26  ;;  %849 = vmax.xlane.f32.xlu0 %v848_v3 }
 0x357   :  { %v539_v52 = vpack.c.bf16 %v523_v5, %v523_v5 }
 0x359   :  { %v732_v10 = vunpack.c.l.b16 %v539_v52  ;;  %v804_v54 = vpop.f32.mrf.mxu2 }
 0x35a   :  { %v2030_v57 = vadd.f32 %v804_v54, %v1762_v44 }
 0x35b   :  { %v733_v23 = vpack.c.b16 %v732_v10, %v731_v7 }
 0x35c   :  { %v851_v2 = vsel %vm187_vm1, %v2030_v57, -inf }
 0x35d   :  { %852 = vmax.xlane.f32.xlu2 %v851_v2  ;;  %1355 = vmatmul.msk.bf16.vlgmr.msrb.gmra.mxu3 %vm187_vm1, %v733_v23 }
 0x361   :  { %v807_v24 = vpop.f32.mrf.mxu2 }
 0x362   :  { %v2036_v28 = vadd.f32 %v807_v24, %v1858_v9 }
 0x364   :  { %v854_v48 = vsel %vm187_vm1, %v2036_v28, -inf }
 0x365   :  { %855 = vmax.xlane.f32.xlu1 %v854_v48 }
 0x368   :  { %v814_v47 = vpop.xlane.xlu0 %813 }
 0x369   :  { %v860_v25 = vsub.f32 %v1955_v63, %v814_v47  ;;  %v809_v44 = vpop.f32.mrf.mxu2 }
 0x36a   :  { %v2042_v34 = vadd.f32 %v809_v44, %v1883_v21 }
 0x36b   :  { %v876_v35 = vmul.f32 1.442695, %v860_v25  ;;  %v587_v25 = vpop.f32.mrf.mxu3 }
 0x36c   :  { %v857_v39 = vsel %vm187_vm1, %v2042_v34, -inf }
 0x36d   :  { %1461 = vpow2.f32 %v876_v35  ;;  %858 = vmax.xlane.f32.xlu0 %v857_v39 }
 0x370   :  { %v817_v29 = vpop.xlane.xlu2 %816 }
 0x371   :  { %v861_v9 = vsub.f32 %v1961_v61, %v817_v29 }
 0x373   :  { %v1462_v43 = vpop.eup %1461  ;;  %v878_v40 = vmul.f32 1.442695, %v861_v9 }
 0x374   :  { %v908_v42 = vsel %vm187_vm1, %v1462_v43, 0.0 }
 0x375   :  { %1463 = vpow2.f32 %v878_v40  ;;  %909 = vadd.xlane.f32.xlu2 %v908_v42 }
 0x378   :  { %v820_v63 = vpop.xlane.xlu1 %819 }
 0x379   :  { %v862_v62 = vsub.f32 %v1966_v19, %v820_v63 }
 0x37b   :  { %v1464_v21 = vpop.eup %1463  ;;  %v880_v41 = vmul.f32 1.442695, %v862_v62 }
 0x37c   :  { %v956_v56 = vpack.c.bf16 %v1464_v21, %v1462_v43  ;;  %v911_v11 = vsel %vm187_vm1, %v1464_v21, 0.0 }
 0x37d   :  { %1465 = vpow2.f32 %v880_v41  ;;  %912 = vadd.xlane.f32.xlu1 %v911_v11 }
 0x37e   :  { %1365 = vmatmul.msk.bf16.vlgmr.msra.gmra.mxu3 %vm187_vm1, %v956_v56 }
 0x380   :  { %v823_v59 = vpop.xlane.xlu0 %822 }
 0x381   :  { %v863_v61 = vsub.f32 %v1971_v53, %v823_v59 }
 0x383   :  { %v1466_v12 = vpop.eup %1465  ;;  %v882_v36 = vmul.f32 1.442695, %v863_v61 }
 0x384   :  { %v914_v15 = vsel %vm187_vm1, %v1466_v12, 0.0 }
 0x385   :  { %1467 = vpow2.f32 %v882_v36  ;;  %915 = vadd.xlane.f32.xlu0 %v914_v15 }
 0x388   :  { %v826_v20 = vpop.xlane.xlu2 %825 }
 0x389   :  { %v864_v19 = vsub.f32 %v1976_v31, %v826_v20 }
 0x38b   :  { %v1468_v17 = vpop.eup %1467  ;;  %v884_v49 = vmul.f32 1.442695, %v864_v19 }
 0x38c   :  { %v917_v16 = vsel %vm187_vm1, %v1468_v17, 0.0  ;;  %v957_v18 = vpack.c.bf16 %v1468_v17, %v1466_v12  ;;  %v2076_v17 = vld [vmem:[%s2121_s4] ss:$0 sm:$0xff]  ;;  %s1552_s4 = smov [#allocation2]  }
 0x38d   :  { %1469 = vpow2.f32 %v884_v49  ;;  %918 = vadd.xlane.f32.xlu2 %v917_v16  ;;  %s1286_s9 = sshll.u32 %s1552_s4, 4  ;;  %s1287_s9 = int_to_ptr.vmem [resolvable:$true] %s1286_s9 }
 0x38e   :  { %1366 = vmatmul.msk.bf16.gmra.mxu3 %vm187_vm1, %v957_v18 }
 0x390   :  { %v829_v26 = vpop.xlane.xlu1 %828 }
 0x391   :  { %v865_v53 = vsub.f32 %v1981_v32, %v829_v26 }
 0x393   :  { %v1470_v3 = vpop.eup %1469  ;;  %v886_v0 = vmul.f32 1.442695, %v865_v53  ;;  %v565_v53 = vadd.f32 %v2076_v17, %v1905_v55 }
 0x394   :  { %v920_v5 = vsel %vm187_vm1, %v1470_v3, 0.0 }
 0x395   :  { %1471 = vpow2.f32 %v886_v0  ;;  %921 = vadd.xlane.f32.xlu1 %v920_v5  ;;  %v592_v0 = vadd.f32 %v587_v25, %v565_v53 }
 0x398   :  { %v832_v52 = vpop.xlane.xlu0 %831 }
 0x399   :  { %v866_v31 = vsub.f32 %v1986_v13, %v832_v52 }
 0x39b   :  { %v1472_v7 = vpop.eup %1471  ;;  %v888_v10 = vmul.f32 1.442695, %v866_v31 }
 0x39c   :  { %v923_v54 = vsel %vm187_vm1, %v1472_v7, 0.0  ;;  %v958_v23 = vpack.c.bf16 %v1472_v7, %v1470_v3 }
 0x39d   :  { %1473 = vpow2.f32 %v888_v10  ;;  %924 = vadd.xlane.f32.xlu0 %v923_v54  ;;  %v566_v54 = vadd.f32 %v2076_v17, %v1909_v4 }
 0x39e   :  { %1367 = vmatmul.msk.bf16.gmra.mxu3 %vm187_vm1, %v958_v23 }
 0x3a0   :  { %v835_v2 = vpop.xlane.xlu2 %834 }
 0x3a1   :  { %v867_v32 = vsub.f32 %v1991_v38, %v835_v2  ;;  %v589_v38 = vpop.f32.mrf.mxu3 }
 0x3a2   :  { %v593_v55 = vadd.f32 %v589_v38, %v566_v54 }
 0x3a3   :  { %v1474_v24 = vpop.eup %1473  ;;  %v890_v48 = vmul.f32 1.442695, %v867_v32 }
 0x3a4   :  { %v926_v47 = vsel %vm187_vm1, %v1474_v24, 0.0 }
 0x3a5   :  { %1475 = vpow2.f32 %v890_v48  ;;  %927 = vadd.xlane.f32.xlu2 %v926_v47  ;;  %v620_v47 = vadd.f32 %v1923_v30, %v593_v55 }
 0x3a8   :  { %v838_v13 = vpop.xlane.xlu1 %837 }
 0x3a9   :  { %v868_v44 = vsub.f32 %v1996_v58, %v838_v13  ;;  %v641_v41 = vpop.f32.mrf.mxu3 }
 0x3ab   :  { %v1476_v35 = vpop.eup %1475  ;;  %v892_v39 = vmul.f32 1.442695, %v868_v44 }
 0x3ac   :  { %v929_v29 = vsel %vm187_vm1, %v1476_v35, 0.0  ;;  %v959_v9 = vpack.c.bf16 %v1476_v35, %v1474_v24 }
 0x3ad   :  { %1477 = vpow2.f32 %v892_v39  ;;  %930 = vadd.xlane.f32.xlu1 %v929_v29 }
 0x3ae   :  { %1368 = vmatmul.msk.bf16.gmra.mxu3 %vm187_vm1, %v959_v9 }
 0x3b0   :  { %v841_v43 = vpop.xlane.xlu0 %840 }
 0x3b1   :  { %v869_v40 = vsub.f32 %v2004_v51, %v841_v43  ;;  %v643_v20 = vpop.f32.mrf.mxu3 }
 0x3b2   :  { %v647_v35 = vadd.f32 %v643_v20, %v620_v47 }
 0x3b3   :  { %v1478_v42 = vpop.eup %1477  ;;  %v894_v63 = vmul.f32 1.442695, %v869_v40 }
 0x3b4   :  { %v932_v62 = vsel %vm187_vm1, %v1478_v42, 0.0 }
 0x3b5   :  { %1479 = vpow2.f32 %v894_v63  ;;  %933 = vadd.xlane.f32.xlu0 %v932_v62 }
 0x3b8   :  { %v844_v58 = vpop.xlane.xlu2 %843 }
 0x3b9   :  { %v870_v21 = vsub.f32 %v2013_v8, %v844_v58  ;;  %v695_v3 = vpop.f32.mrf.mxu3 }
 0x3bb   :  { %v1480_v56 = vpop.eup %1479  ;;  %v896_v11 = vmul.f32 1.442695, %v870_v21 }
 0x3bc   :  { %v935_v59 = vsel %vm187_vm1, %v1480_v56, 0.0  ;;  %v960_v61 = vpack.c.bf16 %v1480_v56, %v1478_v42 }
 0x3bd   :  { %1481 = vpow2.f32 %v896_v11  ;;  %936 = vadd.xlane.f32.xlu2 %v935_v59 }
 0x3be   :  { %1369 = vmatmul.msk.bf16.gmra.mxu3 %vm187_vm1, %v960_v61 }
 0x3c0   :  { %v847_v51 = vpop.xlane.xlu1 %846 }
 0x3c1   :  { %v871_v12 = vsub.f32 %v2018_v14, %v847_v51  ;;  %v697_v2 = vpop.f32.mrf.mxu3 }
 0x3c3   :  { %v1482_v36 = vpop.eup %1481  ;;  %v898_v15 = vmul.f32 1.442695, %v871_v12 }
 0x3c4   :  { %v938_v19 = vsel %vm187_vm1, %v1482_v36, 0.0 }
 0x3c5   :  { %1483 = vpow2.f32 %v898_v15  ;;  %939 = vadd.xlane.f32.xlu1 %v938_v19 }
 0x3c8   :  { %v850_v8 = vpop.xlane.xlu0 %849 }
 0x3c9   :  { %v872_v49 = vsub.f32 %v2025_v27, %v850_v8  ;;  %v619_v27 = vadd.f32 %v1915_v22, %v592_v0 }
 0x3cb   :  { %v1484_v16 = vpop.eup %1483  ;;  %v900_v18 = vmul.f32 1.442695, %v872_v49  ;;  %v646_v23 = vadd.f32 %v641_v41, %v619_v27 }
 0x3cc   :  { %v941_v26 = vsel %vm187_vm1, %v1484_v16, 0.0  ;;  %v961_v14 = vpack.c.bf16 %v1484_v16, %v1482_v36 }
 0x3cd   :  { %1485 = vpow2.f32 %v900_v18  ;;  %942 = vadd.xlane.f32.xlu0 %v941_v26  ;;  %v673_v24 = vadd.f32 %v1929_v6, %v646_v23  ;;  %v674_v6 = vadd.f32 %v1939_v37, %v647_v35 }
 0x3ce   :  { %1370 = vmatmul.msk.bf16.gmra.mxu3 %vm187_vm1, %v961_v14 }
 0x3cf   :  { %v700_v22 = vadd.f32 %v695_v3, %v673_v24  ;;  %v701_v38 = vadd.f32 %v697_v2, %v674_v6 }
 0x3d0   :  { %v853_v5 = vpop.xlane.xlu2 %852 }
 0x3d1   :  { %v873_v52 = vsub.f32 %v2030_v57, %v853_v5  ;;  %v727_v4 = vadd.f32 %v1947_v45, %v700_v22  ;;  %v728_v42 = vadd.f32 %v1950_v1, %v701_v38 }
 0x3d3   :  { %v1486_v31 = vpop.eup %1485  ;;  %v902_v7 = vmul.f32 1.442695, %v873_v52 }
 0x3d4   :  { %v944_v10 = vsel %vm187_vm1, %v1486_v31, 0.0 }
 0x3d5   :  { %1487 = vpow2.f32 %v902_v7  ;;  %945 = vadd.xlane.f32.xlu2 %v944_v10 }
 0x3d8   :  { %v856_v32 = vpop.xlane.xlu1 %855 }
 0x3d9   :  { %v874_v48 = vsub.f32 %v2036_v28, %v856_v32 }
 0x3db   :  { %v1488_v57 = vpop.eup %1487  ;;  %v904_v25 = vmul.f32 1.442695, %v874_v48 }
 0x3dc   :  { %v947_v13 = vsel %vm187_vm1, %v1488_v57, 0.0  ;;  %v962_v44 = vpack.c.bf16 %v1488_v57, %v1486_v31 }
 0x3dd   :  { %1489 = vpow2.f32 %v904_v25  ;;  %948 = vadd.xlane.f32.xlu1 %v947_v13 }
 0x3de   :  { %1371 = vmatmul.msk.bf16.gmra.mxu3 %vm187_vm1, %v962_v44 }
 0x3e0   :  { %v749_v39 = vpop.f32.mrf.mxu3  ;;  %v859_v29 = vpop.xlane.xlu0 %858 }
 0x3e1   :  { %v754_v28 = vadd.f32 %v749_v39, %v727_v4  ;;  %v875_v9 = vsub.f32 %v2042_v34, %v859_v29 }
 0x3e3   :  { %v1490_v30 = vpop.eup %1489  ;;  %756 = vst [vmem:[#allocation2] sm:$0xff] %v754_v28  ;;  %v906_v43 = vmul.f32 1.442695, %v875_v9 }
 0x3e4   :  { %v950_v40 = vsel %vm187_vm1, %v1490_v30, 0.0 }
 0x3e5   :  { %1491 = vpow2.f32 %v906_v43  ;;  %951 = vadd.xlane.f32.xlu0 %v950_v40 }
 0x3e8   :  { %v751_v63 = vpop.f32.mrf.mxu3  ;;  %v910_v34 = vpop.xlane.xlu2 %909 }
 0x3e9   :  { %v755_v62 = vadd.f32 %v751_v63, %v728_v42  ;;  %1493 = vrcp.f32 %v910_v34 }
 0x3eb   :  { %v1492_v45 = vpop.eup %1491  ;;  %757 = vst [vmem:[#allocation2 + $0x8] sm:$0xff] %v755_v62 }
 0x3ec   :  { %v953_v58 = vsel %vm187_vm1, %v1492_v45, 0.0  ;;  %v963_v37 = vpack.c.bf16 %v1492_v45, %v1490_v30 }
 0x3ed   :  { %954 = vadd.xlane.f32.xlu2 %v953_v58 }
 0x3ee   :  { %1372 = vmatmul.msk.bf16.gmra.mxu3 %vm187_vm1, %v963_v37 }
 0x3ef   :  { %v1494_v56 = vpop.eup %1493 }
 0x3f0   :  { %v913_v21 = vpop.xlane.xlu1 %912 }
 0x3f1   :  { %1495 = vrcp.f32 %v913_v21 }
 0x3f7   :  { %v1496_v59 = vpop.eup %1495 }
 0x3f8   :  { %v916_v12 = vpop.xlane.xlu0 %915 }
 0x3f9   :  { %1497 = vrcp.f32 %v916_v12 }
 0x3ff   :  { %v1498_v16 = vpop.eup %1497 }
 0x400   :  { %v919_v19 = vpop.xlane.xlu2 %918 }
 0x401   :  { %v999_v41 = vpop.f32.mrf.mxu3  ;;  %1499 = vrcp.f32 %v919_v19 }
 0x402   :  { %v1055_v11 = vmul.f32 %v1494_v56, %v999_v41 }
 0x404   :  { %v1071_v1 = vpack.c.bf16 %v1055_v11, %v1055_v11 }
 0x406   :  { %v1089_v15 = vunpack.c.l.b16 %v1071_v1 }
 0x407   :  { %v1500_v26 = vpop.eup %1499 }
 0x408   :  { %v922_v0 = vpop.xlane.xlu1 %921 }
 0x409   :  { %v1001_v61 = vpop.f32.mrf.mxu3  ;;  %1501 = vrcp.f32 %v922_v0 }
 0x40a   :  { %v1056_v51 = vmul.f32 %v1496_v59, %v1001_v61 }
 0x40c   :  { %v1072_v36 = vpack.c.bf16 %v1056_v51, %v1056_v51 }
 0x40e   :  { %v1090_v20 = vunpack.c.l.b16 %v1072_v36 }
 0x410   :  { %v1091_v8 = vpack.c.b16 %v1090_v20, %v1089_v15  ;;  %v925_v27 = vpop.xlane.xlu0 %924 }
 0x411   :  { %v1004_v49 = vpop.f32.mrf.mxu3  ;;  %1503 = vrcp.f32 %v925_v27 }
 0x412   :  { %1373 = vmatmul.msk.bf16.vlgmr.msrb.gmra.mxu0 %vm187_vm1, %v1091_v8  ;;  %v1057_v18 = vmul.f32 %v1498_v16, %v1004_v49 }
 0x413   :  { %1198 = vmatpush.bf16.msrb.mxu0 %v1851_v46  ;;  %v1502_v46 = vpop.eup %1501 }
 0x414   :  { %v1073_v53 = vpack.c.bf16 %v1057_v18, %v1057_v18 }
 0x416   :  { %v1113_v52 = vunpack.c.l.b16 %v1073_v53 }
 0x417   :  { %v1504_v23 = vpop.eup %1503 }
 0x418   :  { %v928_v24 = vpop.xlane.xlu2 %927 }
 0x419   :  { %v1006_v14 = vpop.f32.mrf.mxu3  ;;  %1505 = vrcp.f32 %v928_v24 }
 0x41a   :  { %v1058_v3 = vmul.f32 %v1500_v26, %v1006_v14 }
 0x41c   :  { %v1074_v5 = vpack.c.bf16 %v1058_v3, %v1058_v3 }
 0x41e   :  { %v1114_v31 = vunpack.c.l.b16 %v1074_v5 }
 0x420   :  { %v1115_v7 = vpack.c.b16 %v1114_v31, %v1113_v52  ;;  %v931_v22 = vpop.xlane.xlu1 %930 }
 0x421   :  { %v1009_v10 = vpop.f32.mrf.mxu3  ;;  %1507 = vrcp.f32 %v931_v22 }
 0x422   :  { %1374 = vmatmul.msk.bf16.vlgmr.msrb.gmra.mxu1 %vm187_vm1, %v1115_v7  ;;  %v1059_v54 = vmul.f32 %v1502_v46, %v1009_v10 }
 0x423   :  { %1222 = vmatpush.bf16.msrb.mxu1 %v1937_v33  ;;  %v1506_v33 = vpop.eup %1505 }
 0x424   :  { %v1075_v2 = vpack.c.bf16 %v1059_v54, %v1059_v54 }
 0x426   :  { %v1137_v57 = vunpack.c.l.b16 %v1075_v2 }
 0x427   :  { %v1508_v35 = vpop.eup %1507 }
 0x428   :  { %v934_v6 = vpop.xlane.xlu0 %933 }
 0x429   :  { %v1011_v55 = vpop.f32.mrf.mxu3  ;;  %1509 = vrcp.f32 %v934_v6 }
 0x42a   :  { %v1060_v32 = vmul.f32 %v1504_v23, %v1011_v55 }
 0x42c   :  { %v1076_v48 = vpack.c.bf16 %v1060_v32, %v1060_v32 }
 0x42e   :  { %v1138_v47 = vunpack.c.l.b16 %v1076_v48 }
 0x430   :  { %v1139_v25 = vpack.c.b16 %v1138_v47, %v1137_v57  ;;  %v937_v38 = vpop.xlane.xlu2 %936 }
 0x431   :  { %v1014_v13 = vpop.f32.mrf.mxu3  ;;  %1511 = vrcp.f32 %v937_v38 }
 0x432   :  { %1375 = vmatmul.msk.bf16.vlgmr.msra.gmra.mxu0 %vm187_vm1, %v1139_v25  ;;  %v1061_v44 = vmul.f32 %v1506_v33, %v1014_v13 }
 0x433   :  { %1246 = vmatpush.bf16.msra.mxu0 %v1869_v50  ;;  %v1510_v50 = vpop.eup %1509 }
 0x434   :  { %v1077_v39 = vpack.c.bf16 %v1061_v44, %v1061_v44 }
 0x436   :  { %v1161_v9 = vunpack.c.l.b16 %v1077_v39 }
 0x437   :  { %v1512_v63 = vpop.eup %1511 }
 0x438   :  { %v940_v37 = vpop.xlane.xlu1 %939 }
 0x439   :  { %v1016_v4 = vpop.f32.mrf.mxu3  ;;  %1513 = vrcp.f32 %v940_v37 }
 0x43a   :  { %v1062_v29 = vmul.f32 %v1508_v35, %v1016_v4 }
 0x43c   :  { %v1078_v28 = vpack.c.bf16 %v1062_v29, %v1062_v29 }
 0x43e   :  { %v1162_v30 = vunpack.c.l.b16 %v1078_v28 }
 0x43f   :  { %v1514_v61 = vpop.eup %1513 }
 0x440   :  { %v1163_v43 = vpack.c.b16 %v1162_v30, %v1161_v9  ;;  %v943_v56 = vpop.xlane.xlu0 %942 }
 0x441   :  { %v1019_v40 = vpop.f32.mrf.mxu3  ;;  %1515 = vrcp.f32 %v943_v56 }
 0x442   :  { %1376 = vmatmul.msk.bf16.vlgmr.msra.gmra.mxu1 %vm187_vm1, %v1163_v43  ;;  %v1063_v42 = vmul.f32 %v1510_v50, %v1019_v40 }
 0x443   :  { %1270 = vmatpush.bf16.msra.mxu1 %v2007_v60 }
 0x444   :  { %v1079_v45 = vpack.c.bf16 %v1063_v42, %v1063_v42 }
 0x446   :  { %v1185_v21 = vunpack.c.l.b16 %v1079_v45 }
 0x447   :  { %v1516_v60 = vpop.eup %1515 }
 0x448   :  { %v946_v15 = vpop.xlane.xlu2 %945 }
 0x449   :  { %v1021_v62 = vpop.f32.mrf.mxu3  ;;  %1517 = vrcp.f32 %v946_v15 }
 0x44a   :  { %v1064_v58 = vmul.f32 %v1512_v63, %v1021_v62 }
 0x44c   :  { %v1080_v34 = vpack.c.bf16 %v1064_v58, %v1064_v58 }
 0x44e   :  { %v1186_v41 = vunpack.c.l.b16 %v1080_v34 }
 0x44f   :  { %v1518_v26 = vpop.eup %1517 }
 0x450   :  { %v1187_v11 = vpack.c.b16 %v1186_v41, %v1185_v21  ;;  %v949_v49 = vpop.xlane.xlu1 %948 }
 0x451   :  { %v1024_v59 = vpop.f32.mrf.mxu3  ;;  %1519 = vrcp.f32 %v949_v49 }
 0x452   :  { %1377 = vmatmul.msk.bf16.vlgmr.msrb.gmra.mxu0 %vm187_vm1, %v1187_v11  ;;  %v1065_v1 = vmul.f32 %v1514_v61, %v1024_v59 }
 0x454   :  { %v1081_v12 = vpack.c.bf16 %v1065_v1, %v1065_v1 }
 0x456   :  { %v1209_v19 = vunpack.c.l.b16 %v1081_v12 }
 0x457   :  { %v1520_v53 = vpop.eup %1519 }
 0x458   :  { %v952_v52 = vpop.xlane.xlu0 %951 }
 0x459   :  { %v1026_v51 = vpop.f32.mrf.mxu3  ;;  %1521 = vrcp.f32 %v952_v52 }
 0x45a   :  { %v1066_v36 = vmul.f32 %v1516_v60, %v1026_v51 }
 0x45c   :  { %v1082_v20 = vpack.c.bf16 %v1066_v36, %v1066_v36 }
 0x45e   :  { %v1210_v8 = vunpack.c.l.b16 %v1082_v20 }
 0x45f   :  { %v1522_v23 = vpop.eup %1521 }
 0x460   :  { %v1211_v16 = vpack.c.b16 %v1210_v8, %v1209_v19  ;;  %v955_v10 = vpop.xlane.xlu2 %954 }
 0x461   :  { %v1029_v18 = vpop.f32.mrf.mxu3  ;;  %1523 = vrcp.f32 %v955_v10 }
 0x462   :  { %1378 = vmatmul.msk.bf16.vlgmr.msrb.gmra.mxu1 %vm187_vm1, %v1211_v16  ;;  %v1067_v14 = vmul.f32 %v1518_v26, %v1029_v18 }
 0x464   :  { %v1083_v0 = vpack.c.bf16 %v1067_v14, %v1067_v14 }
 0x466   :  { %v1233_v27 = vunpack.c.l.b16 %v1083_v0 }
 0x467   :  { %v1524_v2 = vpop.eup %1523 }
 0x469   :  { %v1031_v3 = vpop.f32.mrf.mxu3 }
 0x46a   :  { %v1068_v5 = vmul.f32 %v1520_v53, %v1031_v3 }
 0x46c   :  { %v1084_v31 = vpack.c.bf16 %v1068_v5, %v1068_v5 }
 0x46e   :  { %v1234_v7 = vunpack.c.l.b16 %v1084_v31 }
 0x470   :  { %v1235_v46 = vpack.c.b16 %v1234_v7, %v1233_v27 }
 0x471   :  { %v1034_v54 = vpop.f32.mrf.mxu3 }
 0x472   :  { %1379 = vmatmul.msk.bf16.vlgmr.msra.gmra.mxu0 %vm187_vm1, %v1235_v46  ;;  %v1069_v55 = vmul.f32 %v1522_v23, %v1034_v54 }
 0x474   :  { %v1085_v24 = vpack.c.bf16 %v1069_v55, %v1069_v55 }
 0x476   :  { %v1257_v47 = vunpack.c.l.b16 %v1085_v24 }
 0x479   :  { %v1036_v32 = vpop.f32.mrf.mxu3 }
 0x47a   :  { %v1070_v48 = vmul.f32 %v1524_v2, %v1036_v32 }
 0x47c   :  { %v1086_v57 = vpack.c.bf16 %v1070_v48, %v1070_v48 }
 0x47e   :  { %v1258_v22 = vunpack.c.l.b16 %v1086_v57 }
 0x480   :  { %v1259_v25 = vpack.c.b16 %v1258_v22, %v1257_v47 }
 0x482   :  { %1380 = vmatmul.msk.bf16.vlgmr.msra.gmra.mxu1 %vm187_vm1, %v1259_v25 }
 0x48f   :  { %v1104_v13 = vpop.f32.mrf.mxu0 }
 0x490   :  { %v1109_v38 = vadd.f32 %v2076_v17, %v1104_v13 }
 0x497   :  { %v1106_v44 = vpop.f32.mrf.mxu0 }
 0x498   :  { %v1110_v62 = vadd.f32 %v2076_v17, %v1106_v44 }
 0x49f   :  { %v1128_v33 = vpop.f32.mrf.mxu1 }
 0x4a0   :  { %v1133_v43 = vadd.f32 %v1128_v33, %v1109_v38 }
 0x4a7   :  { %v1130_v35 = vpop.f32.mrf.mxu1 }
 0x4a8   :  { %v1134_v58 = vadd.f32 %v1130_v35, %v1110_v62 }
 0x4af   :  { %v1152_v4 = vpop.f32.mrf.mxu0 }
 0x4b0   :  { %v1157_v40 = vadd.f32 %v1152_v4, %v1133_v43 }
 0x4b7   :  { %v1154_v29 = vpop.f32.mrf.mxu0 }
 0x4b8   :  { %v1158_v34 = vadd.f32 %v1154_v29, %v1134_v58 }
 0x4bf   :  { %v1176_v39 = vpop.f32.mrf.mxu1 }
 0x4c0   :  { %v1181_v42 = vadd.f32 %v1176_v39, %v1157_v40 }
 0x4c7   :  { %v1178_v6 = vpop.f32.mrf.mxu1 }
 0x4c8   :  { %v1182_v56 = vadd.f32 %v1178_v6, %v1158_v34 }
 0x4cf   :  { %v1200_v28 = vpop.f32.mrf.mxu0 }
 0x4d0   :  { %v1205_v45 = vadd.f32 %v1200_v28, %v1181_v42 }
 0x4d7   :  { %v1202_v30 = vpop.f32.mrf.mxu0 }
 0x4d8   :  { %v1206_v59 = vadd.f32 %v1202_v30, %v1182_v56 }
 0x4df   :  { %v1224_v9 = vpop.f32.mrf.mxu1 }
 0x4e0   :  { %v1229_v37 = vadd.f32 %v1224_v9, %v1205_v45 }
 0x4e7   :  { %v1226_v50 = vpop.f32.mrf.mxu1 }
 0x4e8   :  { %v1230_v1 = vadd.f32 %v1226_v50, %v1206_v59 }
 0x4ef   :  { %v1248_v63 = vpop.f32.mrf.mxu0 }
 0x4f0   :  { %v1253_v21 = vadd.f32 %v1248_v63, %v1229_v37 }
 0x4f7   :  { %v1250_v61 = vpop.f32.mrf.mxu0 }
 0x4f8   :  { %v1254_v60 = vadd.f32 %v1250_v61, %v1230_v1 }
 0x4ff   :  { %v1272_v41 = vpop.f32.mrf.mxu1 }
 0x500   :  { %v1277_v11 = vadd.f32 %v1272_v41, %v1253_v21 }
 0x502   :  { %1280 = vst [vmem:[#allocation2 + $0x10] sm:$0xff] %v1277_v11 }
 0x507   :  { %v1274_v17 = vpop.f32.mrf.mxu1 }
 0x508   :  { %v1278_v51 = vadd.f32 %v1274_v17, %v1254_v60 }
 0x50a   :  { %1281 = vst [vmem:[#allocation2 + $0x18] sm:$0xff] %v1278_v51 }
 0x50b   :  { %1294 = dma.vmem_to_hbm [thread:$0]  %s1287_s9, 512, %s1289_s12, [#allocation3], %s1553_s13, %s1553_s13, %s1554_s1  }
 0x50c   :  { %1549 = dma.done.wait [#allocation3], 512  }
 0x50d   :  { %1550 = vsyncadd [#allocation3], 4294966784 }
 0x50e   :  { %1299 = vsyncpa [#allocation3], 1 }

</bundles_post_ra>
